<compile_context>
chip_gen: v7x
topology: tpu7x:2x2x1
jax: 0.10.0
libtpu: 0.0.40
codegen_flags: <defaults>
</compile_context>

<pallas_src>
import functools

import jax
import jax.numpy as jnp
from jax import lax
from jax.experimental import pallas as pl
from jax.experimental.pallas import tpu as pltpu


_GROUP = 8                 # timesteps per group (grouped gx loads, static offsets)
_MAX_STATIC_GROUPS = 4     # fully unroll the group loop up to 4*8 = 32 steps
_MXU_DTYPE = jnp.bfloat16  # matmul operand dtype (f32 accumulation on the MXU)


def _sigmoid(z):
    # One EUP transcendental (tanh) instead of an exp + reciprocal chain.
    return 0.5 * jnp.tanh(0.5 * z) + 0.5


# ----------------------------------------------------------------------------
# Fused kernel: all phase splits, grid = (split, time_tile).
# ----------------------------------------------------------------------------
def _branched_lstm_kernel(phase_ref, len_ref,
                          x_ref, wih_ref, whh_ref, b_ref, h0_ref, c0_ref,
                          y_ref, h_out_ref, c_out_ref,
                          gx_sc, h_sc, c_sc,
                          *, batch, time_tile):
    del phase_ref  # consumed only by the weight index_maps
    s = pl.program_id(0)          # split index (sequential: state carry)
    t = pl.program_id(1)          # time tile within the padded split
    H = h0_ref.shape[1]
    n_groups = time_tile // _GROUP

    # Load the initial state once, at the very first grid step.
    @pl.when((s == 0) & (t == 0))
    def _():
        h_sc[...] = h0_ref[...]
        c_sc[...] = c0_ref[...]

    # ---- Hoisted input projection: ONE bf16 MXU matmul per tile ------------
    # x tile is time-major flattened: row (j*B + b) = (timestep j, batch b).
    # Padding rows are explicit zeros from the wrapper (never uninitialized).
    gx_sc[...] = (
        jnp.dot(x_ref[0], wih_ref[0], preferred_element_type=jnp.float32)
        + b_ref[0])

    whh = whh_ref[0]              # (H, 4H) bf16, held across the whole tile
    seq_len = len_ref[s]          # valid timesteps in split s
    t0 = t * time_tile

    def run_group(base, h, c):
        row0 = base * batch
        if not isinstance(row0, int):
            row0 = pl.multiple_of(row0, _GROUP * batch)
        # Grouped load of 8 steps' precomputed input gates: (8*B, 4H).
        gx_g = gx_sc[pl.ds(row0, _GROUP * batch), :]
        for j in range(_GROUP):
            gx_t = gx_g[j * batch:(j + 1) * batch, :]            # (B, 4H) static
            gates = gx_t + jnp.dot(h.astype(_MXU_DTYPE), whh,
                                   preferred_element_type=jnp.float32)
            i_g = _sigmoid(gates[:, 0 * H:1 * H])
            f_g = _sigmoid(gates[:, 1 * H:2 * H])
            g_g = jnp.tanh(gates[:, 2 * H:3 * H])
            o_g = _sigmoid(gates[:, 3 * H:4 * H])
            c_new = f_g * c + i_g * g_g
            h_new = o_g * jnp.tanh(c_new)
            # Mask padded steps so the carried state across tiles/splits is exact.
            valid = (t0 + base + j) < seq_len
            h = jnp.where(valid, h_new, h)
            c = jnp.where(valid, c_new, c)
            # TODO(synk): a sublane-dense (B, 8, H) grouped y-store needs a
            # sub-tile sublane concat that Mosaic does not lower; keep per-step
            # stores at static (unrolled) offsets instead.
            y_ref[:, pl.ds(row0 + j * batch, batch), :] = (
                h[None].astype(y_ref.dtype))
        return h, c

    h = h_sc[...]
    c = c_sc[...]
    if n_groups <= _MAX_STATIC_GROUPS:
        # Fully static: best LLO scheduling, bounded vreg pressure.
        for gi in range(n_groups):
            h, c = run_group(gi * _GROUP, h, c)
    else:
        def body(gi, carry):
            return run_group(gi * _GROUP, *carry)
        h, c = lax.fori_loop(0, n_groups, body, (h, c))

    # Carry state to the next grid step through VMEM scratch; final values
    # land in the (grid-invariant) h_out / c_out blocks.
    h_sc[...] = h
    c_sc[...] = c
    h_out_ref[...] = h.astype(h_out_ref.dtype)
    c_out_ref[...] = c.astype(c_out_ref.dtype)


# ----------------------------------------------------------------------------
# Tile sizing (generation-aware VMEM budget).
# ----------------------------------------------------------------------------
def _vmem_capacity_bytes():
    try:
        info = pltpu.get_tpu_info()
        cap = getattr(info, "vmem_capacity_bytes", None)
        if cap:
            return int(cap)
    except Exception:
        pass
    return 64 * 1024 * 1024  # conservative default (v7x per-TensorCore)


def _choose_time_tile(s_pad, batch, d_in, hidden):
    """Largest multiple-of-8 time tile whose working set fits ~45% of VMEM."""
    cap = _vmem_capacity_bytes()
    gates = 4 * hidden
    # Grid-invariant residents (double-buffered by the pipeline): bf16 weights,
    # f32 bias, f32 h0/c0, plus slack for semaphores / alignment.
    const = 2 * ((d_in + hidden) * gates * 2 + gates * 4 + 2 * batch * hidden * 4)
    const += 1 << 20
    budget = max(int(cap * 0.45) - const, 1 << 20)
    # Per-timestep residents: x (bf16, double-buffered), y (f32, double-
    # buffered), gx scratch (f32, single-buffered).
    per_step = 2 * batch * d_in * 2 + 2 * batch * hidden * 4 + batch * gates * 4
    tt = max(_GROUP, min(s_pad, budget // per_step))
    return max(_GROUP, (tt // _GROUP) * _GROUP)


# ----------------------------------------------------------------------------
# Wrapper: all phase splits in one pallas_call.
# ----------------------------------------------------------------------------
def branched_lstm_pallas(x, h0, c0, wih_s, whh_s, bias_s, splits, phases_list):
    """Run every phase split of batch-first x (B, T, D) in ONE pallas_call."""
    B, _, D = x.shape
    _, _, G = wih_s.shape
    H = G // 4
    num_splits = len(splits)

    s_max = max(max(splits), 1)
    s_pad = ((s_max + _GROUP - 1) // _GROUP) * _GROUP
    TT = _choose_time_tile(s_pad, B, D, H)
    s_pad = ((s_pad + TT - 1) // TT) * TT
    n_tiles = s_pad // TT

    # Stack per-split segments, zero-padded to a common tile-aligned length,
    # laid out time-major so a time tile is a contiguous (TT*B, D) slab.
    segs = []
    start = 0
    for length in splits:
        seg = x[:, start:start + length, :]                          # (B, len, D)
        seg = jnp.pad(seg, ((0, 0), (0, s_pad - length), (0, 0)))    # (B, s_pad, D)
        segs.append(jnp.transpose(seg, (1, 0, 2)))                   # (s_pad, B, D)
        start += length
    x_flat = (jnp.stack(segs, axis=0)
              .reshape(num_splits, s_pad * B, D)
              .astype(_MXU_DTYPE))                                   # (S, s_pad*B, D)

    phase_ids = jnp.asarray(phases_list, jnp.int32)
    split_lens = jnp.asarray(splits, jnp.int32)

    cap = _vmem_capacity_bytes()
    vmem_limit = max(32 << 20, min(int(cap * 0.85), 112 << 20))

    kernel = functools.partial(_branched_lstm_kernel, batch=B, time_tile=TT)

    y_flat, h_n, c_n = pl.pallas_call(
        kernel,
        out_shape=(
            jax.ShapeDtypeStruct((num_splits, s_pad * B, H), jnp.float32),
            jax.ShapeDtypeStruct((B, H), jnp.float32),
            jax.ShapeDtypeStruct((B, H), jnp.float32),
        ),
        grid_spec=pltpu.PrefetchScalarGridSpec(
            num_scalar_prefetch=2,                 # phase ids, split lengths
            grid=(num_splits, n_tiles),
            in_specs=[
                pl.BlockSpec((1, TT * B, D), lambda s, t, ph, ln: (s, t, 0)),
                pl.BlockSpec((1, D, G), lambda s, t, ph, ln: (ph[s], 0, 0)),
                pl.BlockSpec((1, H, G), lambda s, t, ph, ln: (ph[s], 0, 0)),
                pl.BlockSpec((1, 1, G), lambda s, t, ph, ln: (ph[s], 0, 0)),
                pl.BlockSpec((B, H), lambda s, t, ph, ln: (0, 0)),
                pl.BlockSpec((B, H), lambda s, t, ph, ln: (0, 0)),
            ],
            out_specs=[
                pl.BlockSpec((1, TT * B, H), lambda s, t, ph, ln: (s, t, 0)),
                pl.BlockSpec((B, H), lambda s, t, ph, ln: (0, 0)),
                pl.BlockSpec((B, H), lambda s, t, ph, ln: (0, 0)),
            ],
            scratch_shapes=[
                pltpu.VMEM((TT * B, G), jnp.float32),   # hoisted input gates
                pltpu.VMEM((B, H), jnp.float32),        # h carry
                pltpu.VMEM((B, H), jnp.float32),        # c carry
            ],
        ),
        compiler_params=pltpu.CompilerParams(
            dimension_semantics=("arbitrary", "arbitrary"),  # state carry
            vmem_limit_bytes=vmem_limit,
        ),
    )(phase_ids, split_lens, x_flat, wih_s, whh_s, bias_s, h0, c0)

    # Un-pad, restore batch-first layout and re-concatenate along time.
    # NOTE(perf): padding H to a lane multiple (128) and adding a "parallel"
    # batch grid axis (v7x second TensorCore) would help at production shapes.
    y_splits = []
    for i in range(num_splits):
        y_i = y_flat[i].reshape(s_pad, B, H).transpose(1, 0, 2)      # (B, s_pad, H)
        y_splits.append(y_i[:, :splits[i], :])
    y = jnp.concatenate(y_splits, axis=1)
    return y, (h_n, c_n)


# ----------------------------------------------------------------------------
# BranchedLSTM wrapper (glue in plain JAX, hot path in the fused Pallas kernel).
# ----------------------------------------------------------------------------
def get_splits_and_phases(num_phases, seq_len):
    # Synthetic stand-in for the project's Settings-based helper:
    # even split of the sequence across phases, phase i for split i.
    base = seq_len // num_phases
    splits = [base] * num_phases
    splits[-1] += seq_len - base * num_phases
    phases = list(range(num_phases))
    return splits, phases


class BranchedLSTMPallas:
    def __init__(self, num_phases, input_size, hidden_size, seq_len, key):
        self.num_phases = num_phases
        self.input_size = input_size
        self.hidden_size = hidden_size

        # set_splits(settings) semantics.
        self.splits, self.phases = get_splits_and_phases(num_phases, seq_len)
        self.splits[0] += 1
        self.splits[-1] -= 1

        # Deterministic per-phase LSTM parameters (nn.LSTM shapes), kept in f32
        # for the reference and stacked / pre-transposed / bf16-cast for the kernel.
        self.params_f32 = []
        wih_list, whh_list, bias_list = [], [], []
        k = 1.0 / jnp.sqrt(jnp.float32(hidden_size))
        for p in range(num_phases):
            ks = jax.random.split(jax.random.fold_in(key, p), 4)
            w_ih = jax.random.uniform(ks[0], (4 * hidden_size, input_size),
                                      jnp.float32, -k, k)
            w_hh = jax.random.uniform(ks[1], (4 * hidden_size, hidden_size),
                                      jnp.float32, -k, k)
            b_ih = jax.random.uniform(ks[2], (4 * hidden_size,),
                                      jnp.float32, -k, k)
            b_hh = jax.random.uniform(ks[3], (4 * hidden_size,),
                                      jnp.float32, -k, k)
            wih_t = w_ih.T
            whh_t = w_hh.T
            bias = (b_ih + b_hh).reshape(1, -1)
            self.params_f32.append((wih_t, whh_t, bias))
            wih_list.append(wih_t)
            whh_list.append(whh_t)
            bias_list.append(bias)
        self.wih_s = jnp.stack(wih_list).astype(_MXU_DTYPE)   # (P, D, 4H)
        self.whh_s = jnp.stack(whh_list).astype(_MXU_DTYPE)   # (P, H, 4H)
        self.bias_s = jnp.stack(bias_list)                    # (P, 1, 4H) f32

    def __call__(self, x, state, phases, single_step):
        B = x.shape[0]
        if state is None:
            h0 = jnp.zeros((B, self.hidden_size), jnp.float32)
            c0 = jnp.zeros((B, self.hidden_size), jnp.float32)
        else:
            h0, c0 = state
        if single_step:
            # phases[0].item() in the PyTorch module: host-side phase pick.
            phase = int(phases[0]) if state is not None else self.phases[0]
            return branched_lstm_pallas(x, h0, c0, self.wih_s, self.whh_s,
                                        self.bias_s, [x.shape[1]], [phase])
        return branched_lstm_pallas(x, h0, c0, self.wih_s, self.whh_s,
                                    self.bias_s, self.splits, self.phases)


# ----------------------------------------------------------------------------
# Pure-JAX reference (lax.scan) matching the kernel's bf16 MXU operands.
# ----------------------------------------------------------------------------
def _lstm_chunk_ref(x_tm, wih_t, whh_t, bias, h0, c0):
    H = h0.shape[-1]
    wih_b = wih_t.astype(_MXU_DTYPE)
    whh_b = whh_t.astype(_MXU_DTYPE)

    def step(carry, x_t):
        h, c = carry
        g = (jnp.dot(x_t.astype(_MXU_DTYPE), wih_b,
                     preferred_element_type=jnp.float32)
             + jnp.dot(h.astype(_MXU_DTYPE), whh_b,
                       preferred_element_type=jnp.float32)
             + bias[0])
        i = jax.nn.sigmoid(g[:, 0 * H:1 * H])
        f = jax.nn.sigmoid(g[:, 1 * H:2 * H])
        gg = jnp.tanh(g[:, 2 * H:3 * H])
        o = jax.nn.sigmoid(g[:, 3 * H:4 * H])
        c = f * c + i * gg
        h = o * jnp.tanh(c)
        return (h, c), h

    (h, c), ys = lax.scan(step, (h0, c0), x_tm)
    return ys, (h, c)


def _branched_ref(model, x, state):
    start = 0
    y_splits = []
    for phase, s in zip(model.phases, model.splits):
        x_split = jnp.transpose(x[:, start:start + s, :], (1, 0, 2))
        start += s
        wih_t, whh_t, bias = model.params_f32[phase]
        if state is None:
            B = x.shape[0]
            state = (jnp.zeros((B, model.hidden_size), jnp.float32),
                     jnp.zeros((B, model.hidden_size), jnp.float32))
        y_tm, state = _lstm_chunk_ref(x_split, wih_t, whh_t, bias, *state)
        y_splits.append(jnp.transpose(y_tm, (1, 0, 2)))
    return jnp.concatenate(y_splits, axis=1), state


if __name__ == "__main__":
    B, T, D_IN, H, NUM_PHASES = 2, 8, 16, 32, 2

    key = jax.random.PRNGKey(0)
    kx, kp = jax.random.split(key)
    x = jax.random.normal(kx, (B, T, D_IN), jnp.float32)

    model = BranchedLSTMPallas(NUM_PHASES, D_IN, H, T, kp)

    # Branched (multi-split) path: one fused pallas_call for all phase splits.
    branched = jax.jit(lambda inp: model(inp, None, None, single_step=False))
    y, (h_n, c_n) = branched(x)
    jax.block_until_ready(y)
    jax.block_until_ready(h_n)
    jax.block_until_ready(c_n)

    # Single-step path (whole x through one phase LSTM, zero initial state).
    single = jax.jit(lambda inp: model(inp, None, None, single_step=True))
    y1, st1 = single(x)
    jax.block_until_ready(y1)

    # Single-step continuation with an explicit phase tensor + carried state
    # (mirrors phases[0].item(): host-side module selection, outside jit).
    y2, st2 = model(x, st1, jnp.array([1], jnp.int32), single_step=True)
    jax.block_until_ready(y2)

    # Correctness checks vs. the bf16-operand-matched pure-JAX reference.
    y_ref, (h_ref, c_ref) = _branched_ref(model, x, None)
    assert y.shape == (B, T, H)
    assert y1.shape == (B, T, H) and y2.shape == (B, T, H)
    assert jnp.allclose(y, y_ref, atol=2e-3, rtol=2e-3)
    assert jnp.allclose(h_n, h_ref, atol=2e-3, rtol=2e-3)
    assert jnp.allclose(c_n, c_ref, atol=2e-3, rtol=2e-3)

    # Single-step path check (phase 0 over the whole sequence).
    wih0, whh0, bias0 = model.params_f32[0]
    y1_ref, _ = _lstm_chunk_ref(jnp.transpose(x, (1, 0, 2)), wih0, whh0, bias0,
                                jnp.zeros((B, H), jnp.float32),
                                jnp.zeros((B, H), jnp.float32))
    assert jnp.allclose(y1, jnp.transpose(y1_ref, (1, 0, 2)),
                        atol=2e-3, rtol=2e-3)

    print("KERNEL_OK")
</pallas_src>

<mosaic_0001>
module attributes {stable_mosaic.version = 11 : i64} {
  func.func @_branched_lstm_kernel(%arg0: i32, %arg1: i32, %arg2: memref<2xi32, #tpu.memory_space<smem>>, %arg3: memref<2xi32, #tpu.memory_space<smem>>, %arg4: memref<1x16x16xbf16, #tpu.memory_space<vmem>>, %arg5: memref<1x16x128xbf16, #tpu.memory_space<vmem>>, %arg6: memref<1x32x128xbf16, #tpu.memory_space<vmem>>, %arg7: memref<1x1x128xf32, #tpu.memory_space<vmem>>, %arg8: memref<2x32xf32, #tpu.memory_space<vmem>>, %arg9: memref<2x32xf32, #tpu.memory_space<vmem>>, %arg10: memref<1x16x32xf32, #tpu.memory_space<vmem>>, %arg11: memref<2x32xf32, #tpu.memory_space<vmem>>, %arg12: memref<2x32xf32, #tpu.memory_space<vmem>>, %arg13: memref<16x128xf32, #tpu.memory_space<vmem>>, %arg14: memref<2x32xf32, #tpu.memory_space<vmem>>, %arg15: memref<2x32xf32, #tpu.memory_space<vmem>>) attributes {dimension_semantics = [#tpu.dimension_semantics<arbitrary>, #tpu.dimension_semantics<arbitrary>], iteration_bounds = array<i64: 2, 1>, scalar_prefetch = 2 : i64, scratch_operands = 3 : i64, tpu.core_type = #tpu.core_type<tc>, window_params = [{transform_indices = @transform_0, window_bounds = array<i64: 1, 16, 16>}, {transform_indices = @transform_1, window_bounds = array<i64: 1, 16, 128>}, {transform_indices = @transform_2, window_bounds = array<i64: 1, 32, 128>}, {transform_indices = @transform_3, window_bounds = array<i64: 1, 1, 128>}, {pipeline_mode = #tpu.pipeline_mode<synchronous>, transform_indices = @transform_4, window_bounds = array<i64: 2, 32>}, {pipeline_mode = #tpu.pipeline_mode<synchronous>, transform_indices = @transform_5, window_bounds = array<i64: 2, 32>}, {transform_indices = @transform_6, window_bounds = array<i64: 1, 16, 32>}, {pipeline_mode = #tpu.pipeline_mode<synchronous>, transform_indices = @transform_7, window_bounds = array<i64: 2, 32>}, {pipeline_mode = #tpu.pipeline_mode<synchronous>, transform_indices = @transform_8, window_bounds = array<i64: 2, 32>}]} {
    %c0_i32 = arith.constant 0 : i32
    %0 = arith.cmpi eq, %arg0, %c0_i32 : i32
    %c0_i32_0 = arith.constant 0 : i32
    %1 = arith.cmpi eq, %arg1, %c0_i32_0 : i32
    %2 = arith.andi %0, %1 : i1
    %3 = arith.extui %2 : i1 to i32
    %c0_i32_1 = arith.constant 0 : i32
    %4 = arith.cmpi ne, %3, %c0_i32_1 : i32
    scf.if %4 {
      %c0_135 = arith.constant 0 : index
      %c0_136 = arith.constant 0 : index
      %363 = vector.load %arg8[%c0_135, %c0_136] : memref<2x32xf32, #tpu.memory_space<vmem>>, vector<2x32xf32>
      %c0_137 = arith.constant 0 : index
      %c0_138 = arith.constant 0 : index
      %364 = vector.load %arg14[%c0_137, %c0_138] : memref<2x32xf32, #tpu.memory_space<vmem>>, vector<2x32xf32>
      tpu.vector_store %arg14[%c0_137, %c0_138], %363 {strides = array<i32>} : memref<2x32xf32, #tpu.memory_space<vmem>>, vector<2x32xf32>,
      %c0_139 = arith.constant 0 : index
      %c0_140 = arith.constant 0 : index
      %365 = vector.load %arg9[%c0_139, %c0_140] : memref<2x32xf32, #tpu.memory_space<vmem>>, vector<2x32xf32>
      %c0_141 = arith.constant 0 : index
      %c0_142 = arith.constant 0 : index
      %366 = vector.load %arg15[%c0_141, %c0_142] : memref<2x32xf32, #tpu.memory_space<vmem>>, vector<2x32xf32>
      tpu.vector_store %arg15[%c0_141, %c0_142], %365 {strides = array<i32>} : memref<2x32xf32, #tpu.memory_space<vmem>>, vector<2x32xf32>,
    } else {
    }
    %c0 = arith.constant 0 : index
    %c0_2 = arith.constant 0 : index
    %c0_3 = arith.constant 0 : index
    %5 = vector.load %arg4[%c0, %c0_2, %c0_3] : memref<1x16x16xbf16, #tpu.memory_space<vmem>>, vector<1x16x16xbf16>
    %6 = vector.shape_cast %5 : vector<1x16x16xbf16> to vector<16x16xbf16>
    %c0_4 = arith.constant 0 : index
    %c0_5 = arith.constant 0 : index
    %c0_6 = arith.constant 0 : index
    %7 = vector.load %arg5[%c0_4, %c0_5, %c0_6] : memref<1x16x128xbf16, #tpu.memory_space<vmem>>, vector<1x16x128xbf16>
    %8 = vector.shape_cast %7 : vector<1x16x128xbf16> to vector<16x128xbf16>
    %cst = arith.constant dense<0.000000e+00> : vector<16x128xf32>
    %9 = tpu.matmul %6, %8, %cst {dimension_numbers = #tpu.dot_dimension_numbers<[1], [0], [0], [1], [0, 0, 1, 1], [], []>} : vector<16x16xbf16>, vector<16x128xbf16>, vector<16x128xf32> -> vector<16x128xf32>
    %c0_7 = arith.constant 0 : index
    %c0_8 = arith.constant 0 : index
    %c0_9 = arith.constant 0 : index
    %10 = vector.load %arg7[%c0_7, %c0_8, %c0_9] : memref<1x1x128xf32, #tpu.memory_space<vmem>>, vector<1x1x128xf32>
    %11 = vector.shape_cast %10 : vector<1x1x128xf32> to vector<1x128xf32>
    %12 = vector.broadcast %11 : vector<1x128xf32> to vector<16x128xf32>
    %13 = arith.addf %9, %12 : vector<16x128xf32>
    %c0_10 = arith.constant 0 : index
    %c0_11 = arith.constant 0 : index
    %14 = vector.load %arg13[%c0_10, %c0_11] : memref<16x128xf32, #tpu.memory_space<vmem>>, vector<16x128xf32>
    tpu.vector_store %arg13[%c0_10, %c0_11], %13 {strides = array<i32>} : memref<16x128xf32, #tpu.memory_space<vmem>>, vector<16x128xf32>,
    %c0_12 = arith.constant 0 : index
    %c0_13 = arith.constant 0 : index
    %c0_14 = arith.constant 0 : index
    %15 = vector.load %arg6[%c0_12, %c0_13, %c0_14] : memref<1x32x128xbf16, #tpu.memory_space<vmem>>, vector<1x32x128xbf16>
    %16 = vector.shape_cast %15 : vector<1x32x128xbf16> to vector<32x128xbf16>
    %17 = arith.index_cast %arg0 : i32 to index
    %18 = memref.load %arg3[%17] : memref<2xi32, #tpu.memory_space<smem>>
    %c8_i32 = arith.constant 8 : i32
    %19 = arith.muli %arg1, %c8_i32 : i32
    %c0_15 = arith.constant 0 : index
    %c0_16 = arith.constant 0 : index
    %20 = vector.load %arg14[%c0_15, %c0_16] : memref<2x32xf32, #tpu.memory_space<vmem>>, vector<2x32xf32>
    %c0_17 = arith.constant 0 : index
    %c0_18 = arith.constant 0 : index
    %21 = vector.load %arg15[%c0_17, %c0_18] : memref<2x32xf32, #tpu.memory_space<vmem>>, vector<2x32xf32>
    %c0_19 = arith.constant 0 : index
    %c0_20 = arith.constant 0 : index
    %22 = vector.load %arg13[%c0_19, %c0_20] : memref<16x128xf32, #tpu.memory_space<vmem>>, vector<16x128xf32>
    %23 = vector.extract_strided_slice %22 {offsets = [0, 0], sizes = [2, 128], strides = [1, 1]} : vector<16x128xf32> to vector<2x128xf32>
    %24 = arith.truncf %20 : vector<2x32xf32> to vector<2x32xbf16>
    %cst_21 = arith.constant dense<0.000000e+00> : vector<2x128xf32>
    %25 = tpu.matmul %24, %16, %cst_21 {dimension_numbers = #tpu.dot_dimension_numbers<[1], [0], [0], [1], [0, 0, 1, 1], [], []>} : vector<2x32xbf16>, vector<32x128xbf16>, vector<2x128xf32> -> vector<2x128xf32>
    %26 = arith.addf %23, %25 : vector<2x128xf32>
    %27 = vector.extract_strided_slice %26 {offsets = [0, 0], sizes = [2, 32], strides = [1, 1]} : vector<2x128xf32> to vector<2x32xf32>
    %cst_22 = arith.constant 5.000000e-01 : f32
    %28 = vector.broadcast %cst_22 : f32 to vector<2x32xf32>
    %29 = arith.mulf %28, %27 : vector<2x32xf32>
    %30 = math.tanh %29 : vector<2x32xf32>
    %cst_23 = arith.constant 5.000000e-01 : f32
    %31 = vector.broadcast %cst_23 : f32 to vector<2x32xf32>
    %32 = arith.mulf %31, %30 : vector<2x32xf32>
    %cst_24 = arith.constant 5.000000e-01 : f32
    %33 = vector.broadcast %cst_24 : f32 to vector<2x32xf32>
    %34 = arith.addf %32, %33 : vector<2x32xf32>
    %35 = vector.extract_strided_slice %26 {offsets = [0, 32], sizes = [2, 32], strides = [1, 1]} : vector<2x128xf32> to vector<2x32xf32>
    %cst_25 = arith.constant 5.000000e-01 : f32
    %36 = vector.broadcast %cst_25 : f32 to vector<2x32xf32>
    %37 = arith.mulf %36, %35 : vector<2x32xf32>
    %38 = math.tanh %37 : vector<2x32xf32>
    %cst_26 = arith.constant 5.000000e-01 : f32
    %39 = vector.broadcast %cst_26 : f32 to vector<2x32xf32>
    %40 = arith.mulf %39, %38 : vector<2x32xf32>
    %cst_27 = arith.constant 5.000000e-01 : f32
    %41 = vector.broadcast %cst_27 : f32 to vector<2x32xf32>
    %42 = arith.addf %40, %41 : vector<2x32xf32>
    %43 = vector.extract_strided_slice %26 {offsets = [0, 64], sizes = [2, 32], strides = [1, 1]} : vector<2x128xf32> to vector<2x32xf32>
    %44 = math.tanh %43 : vector<2x32xf32>
    %45 = vector.extract_strided_slice %26 {offsets = [0, 96], sizes = [2, 32], strides = [1, 1]} : vector<2x128xf32> to vector<2x32xf32>
    %cst_28 = arith.constant 5.000000e-01 : f32
    %46 = vector.broadcast %cst_28 : f32 to vector<2x32xf32>
    %47 = arith.mulf %46, %45 : vector<2x32xf32>
    %48 = math.tanh %47 : vector<2x32xf32>
    %cst_29 = arith.constant 5.000000e-01 : f32
    %49 = vector.broadcast %cst_29 : f32 to vector<2x32xf32>
    %50 = arith.mulf %49, %48 : vector<2x32xf32>
    %cst_30 = arith.constant 5.000000e-01 : f32
    %51 = vector.broadcast %cst_30 : f32 to vector<2x32xf32>
    %52 = arith.addf %50, %51 : vector<2x32xf32>
    %53 = arith.mulf %42, %21 : vector<2x32xf32>
    %54 = arith.mulf %34, %44 : vector<2x32xf32>
    %55 = arith.addf %53, %54 : vector<2x32xf32>
    %56 = math.tanh %55 : vector<2x32xf32>
    %57 = arith.mulf %52, %56 : vector<2x32xf32>
    %c0_i32_31 = arith.constant 0 : i32
    %58 = arith.addi %19, %c0_i32_31 : i32
    %c0_i32_32 = arith.constant 0 : i32
    %59 = arith.addi %58, %c0_i32_32 : i32
    %60 = arith.cmpi slt, %59, %18 : i32
    %61 = arith.select %60, %57, %20 : vector<2x32xf32>
    %62 = arith.select %60, %55, %21 : vector<2x32xf32>
    %63 = vector.shape_cast %61 : vector<2x32xf32> to vector<1x2x32xf32>
    %c0_33 = arith.constant 0 : index
    %c0_34 = arith.constant 0 : index
    %c0_35 = arith.constant 0 : index
    %64 = vector.load %arg10[%c0_33, %c0_34, %c0_35] : memref<1x16x32xf32, #tpu.memory_space<vmem>>, vector<1x2x32xf32>
    tpu.vector_store %arg10[%c0_33, %c0_34, %c0_35], %63 {strides = array<i32>} : memref<1x16x32xf32, #tpu.memory_space<vmem>>, vector<1x2x32xf32>,
    %65 = vector.extract_strided_slice %22 {offsets = [2, 0], sizes = [2, 128], strides = [1, 1]} : vector<16x128xf32> to vector<2x128xf32>
    %66 = arith.truncf %61 : vector<2x32xf32> to vector<2x32xbf16>
    %cst_36 = arith.constant dense<0.000000e+00> : vector<2x128xf32>
    %67 = tpu.matmul %66, %16, %cst_36 {dimension_numbers = #tpu.dot_dimension_numbers<[1], [0], [0], [1], [0, 0, 1, 1], [], []>} : vector<2x32xbf16>, vector<32x128xbf16>, vector<2x128xf32> -> vector<2x128xf32>
    %68 = arith.addf %65, %67 : vector<2x128xf32>
    %69 = vector.extract_strided_slice %68 {offsets = [0, 0], sizes = [2, 32], strides = [1, 1]} : vector<2x128xf32> to vector<2x32xf32>
    %cst_37 = arith.constant 5.000000e-01 : f32
    %70 = vector.broadcast %cst_37 : f32 to vector<2x32xf32>
    %71 = arith.mulf %70, %69 : vector<2x32xf32>
    %72 = math.tanh %71 : vector<2x32xf32>
    %cst_38 = arith.constant 5.000000e-01 : f32
    %73 = vector.broadcast %cst_38 : f32 to vector<2x32xf32>
    %74 = arith.mulf %73, %72 : vector<2x32xf32>
    %cst_39 = arith.constant 5.000000e-01 : f32
    %75 = vector.broadcast %cst_39 : f32 to vector<2x32xf32>
    %76 = arith.addf %74, %75 : vector<2x32xf32>
    %77 = vector.extract_strided_slice %68 {offsets = [0, 32], sizes = [2, 32], strides = [1, 1]} : vector<2x128xf32> to vector<2x32xf32>
    %cst_40 = arith.constant 5.000000e-01 : f32
    %78 = vector.broadcast %cst_40 : f32 to vector<2x32xf32>
    %79 = arith.mulf %78, %77 : vector<2x32xf32>
    %80 = math.tanh %79 : vector<2x32xf32>
    %cst_41 = arith.constant 5.000000e-01 : f32
    %81 = vector.broadcast %cst_41 : f32 to vector<2x32xf32>
    %82 = arith.mulf %81, %80 : vector<2x32xf32>
    %cst_42 = arith.constant 5.000000e-01 : f32
    %83 = vector.broadcast %cst_42 : f32 to vector<2x32xf32>
    %84 = arith.addf %82, %83 : vector<2x32xf32>
    %85 = vector.extract_strided_slice %68 {offsets = [0, 64], sizes = [2, 32], strides = [1, 1]} : vector<2x128xf32> to vector<2x32xf32>
    %86 = math.tanh %85 : vector<2x32xf32>
    %87 = vector.extract_strided_slice %68 {offsets = [0, 96], sizes = [2, 32], strides = [1, 1]} : vector<2x128xf32> to vector<2x32xf32>
    %cst_43 = arith.constant 5.000000e-01 : f32
    %88 = vector.broadcast %cst_43 : f32 to vector<2x32xf32>
    %89 = arith.mulf %88, %87 : vector<2x32xf32>
    %90 = math.tanh %89 : vector<2x32xf32>
    %cst_44 = arith.constant 5.000000e-01 : f32
    %91 = vector.broadcast %cst_44 : f32 to vector<2x32xf32>
    %92 = arith.mulf %91, %90 : vector<2x32xf32>
    %cst_45 = arith.constant 5.000000e-01 : f32
    %93 = vector.broadcast %cst_45 : f32 to vector<2x32xf32>
    %94 = arith.addf %92, %93 : vector<2x32xf32>
    %95 = arith.mulf %84, %62 : vector<2x32xf32>
    %96 = arith.mulf %76, %86 : vector<2x32xf32>
    %97 = arith.addf %95, %96 : vector<2x32xf32>
    %98 = math.tanh %97 : vector<2x32xf32>
    %99 = arith.mulf %94, %98 : vector<2x32xf32>
    %c0_i32_46 = arith.constant 0 : i32
    %100 = arith.addi %19, %c0_i32_46 : i32
    %c1_i32 = arith.constant 1 : i32
    %101 = arith.addi %100, %c1_i32 : i32
    %102 = arith.cmpi slt, %101, %18 : i32
    %103 = arith.select %102, %99, %61 : vector<2x32xf32>
    %104 = arith.select %102, %97, %62 : vector<2x32xf32>
    %105 = vector.shape_cast %103 : vector<2x32xf32> to vector<1x2x32xf32>
    %c0_47 = arith.constant 0 : index
    %c2 = arith.constant 2 : index
    %c0_48 = arith.constant 0 : index
    %106 = vector.load %arg10[%c0_47, %c2, %c0_48] : memref<1x16x32xf32, #tpu.memory_space<vmem>>, vector<1x2x32xf32>
    tpu.vector_store %arg10[%c0_47, %c2, %c0_48], %105 {strides = array<i32>} : memref<1x16x32xf32, #tpu.memory_space<vmem>>, vector<1x2x32xf32>,
    %107 = vector.extract_strided_slice %22 {offsets = [4, 0], sizes = [2, 128], strides = [1, 1]} : vector<16x128xf32> to vector<2x128xf32>
    %108 = arith.truncf %103 : vector<2x32xf32> to vector<2x32xbf16>
    %cst_49 = arith.constant dense<0.000000e+00> : vector<2x128xf32>
    %109 = tpu.matmul %108, %16, %cst_49 {dimension_numbers = #tpu.dot_dimension_numbers<[1], [0], [0], [1], [0, 0, 1, 1], [], []>} : vector<2x32xbf16>, vector<32x128xbf16>, vector<2x128xf32> -> vector<2x128xf32>
    %110 = arith.addf %107, %109 : vector<2x128xf32>
    %111 = vector.extract_strided_slice %110 {offsets = [0, 0], sizes = [2, 32], strides = [1, 1]} : vector<2x128xf32> to vector<2x32xf32>
    %cst_50 = arith.constant 5.000000e-01 : f32
    %112 = vector.broadcast %cst_50 : f32 to vector<2x32xf32>
    %113 = arith.mulf %112, %111 : vector<2x32xf32>
    %114 = math.tanh %113 : vector<2x32xf32>
    %cst_51 = arith.constant 5.000000e-01 : f32
    %115 = vector.broadcast %cst_51 : f32 to vector<2x32xf32>
    %116 = arith.mulf %115, %114 : vector<2x32xf32>
    %cst_52 = arith.constant 5.000000e-01 : f32
    %117 = vector.broadcast %cst_52 : f32 to vector<2x32xf32>
    %118 = arith.addf %116, %117 : vector<2x32xf32>
    %119 = vector.extract_strided_slice %110 {offsets = [0, 32], sizes = [2, 32], strides = [1, 1]} : vector<2x128xf32> to vector<2x32xf32>
    %cst_53 = arith.constant 5.000000e-01 : f32
    %120 = vector.broadcast %cst_53 : f32 to vector<2x32xf32>
    %121 = arith.mulf %120, %119 : vector<2x32xf32>
    %122 = math.tanh %121 : vector<2x32xf32>
    %cst_54 = arith.constant 5.000000e-01 : f32
    %123 = vector.broadcast %cst_54 : f32 to vector<2x32xf32>
    %124 = arith.mulf %123, %122 : vector<2x32xf32>
    %cst_55 = arith.constant 5.000000e-01 : f32
    %125 = vector.broadcast %cst_55 : f32 to vector<2x32xf32>
    %126 = arith.addf %124, %125 : vector<2x32xf32>
    %127 = vector.extract_strided_slice %110 {offsets = [0, 64], sizes = [2, 32], strides = [1, 1]} : vector<2x128xf32> to vector<2x32xf32>
    %128 = math.tanh %127 : vector<2x32xf32>
    %129 = vector.extract_strided_slice %110 {offsets = [0, 96], sizes = [2, 32], strides = [1, 1]} : vector<2x128xf32> to vector<2x32xf32>
    %cst_56 = arith.constant 5.000000e-01 : f32
    %130 = vector.broadcast %cst_56 : f32 to vector<2x32xf32>
    %131 = arith.mulf %130, %129 : vector<2x32xf32>
    %132 = math.tanh %131 : vector<2x32xf32>
    %cst_57 = arith.constant 5.000000e-01 : f32
    %133 = vector.broadcast %cst_57 : f32 to vector<2x32xf32>
    %134 = arith.mulf %133, %132 : vector<2x32xf32>
    %cst_58 = arith.constant 5.000000e-01 : f32
    %135 = vector.broadcast %cst_58 : f32 to vector<2x32xf32>
    %136 = arith.addf %134, %135 : vector<2x32xf32>
    %137 = arith.mulf %126, %104 : vector<2x32xf32>
    %138 = arith.mulf %118, %128 : vector<2x32xf32>
    %139 = arith.addf %137, %138 : vector<2x32xf32>
    %140 = math.tanh %139 : vector<2x32xf32>
    %141 = arith.mulf %136, %140 : vector<2x32xf32>
    %c0_i32_59 = arith.constant 0 : i32
    %142 = arith.addi %19, %c0_i32_59 : i32
    %c2_i32 = arith.constant 2 : i32
    %143 = arith.addi %142, %c2_i32 : i32
    %144 = arith.cmpi slt, %143, %18 : i32
    %145 = arith.select %144, %141, %103 : vector<2x32xf32>
    %146 = arith.select %144, %139, %104 : vector<2x32xf32>
    %147 = vector.shape_cast %145 : vector<2x32xf32> to vector<1x2x32xf32>
    %c0_60 = arith.constant 0 : index
    %c4 = arith.constant 4 : index
    %c0_61 = arith.constant 0 : index
    %148 = vector.load %arg10[%c0_60, %c4, %c0_61] : memref<1x16x32xf32, #tpu.memory_space<vmem>>, vector<1x2x32xf32>
    tpu.vector_store %arg10[%c0_60, %c4, %c0_61], %147 {strides = array<i32>} : memref<1x16x32xf32, #tpu.memory_space<vmem>>, vector<1x2x32xf32>,
    %149 = vector.extract_strided_slice %22 {offsets = [6, 0], sizes = [2, 128], strides = [1, 1]} : vector<16x128xf32> to vector<2x128xf32>
    %150 = arith.truncf %145 : vector<2x32xf32> to vector<2x32xbf16>
    %cst_62 = arith.constant dense<0.000000e+00> : vector<2x128xf32>
    %151 = tpu.matmul %150, %16, %cst_62 {dimension_numbers = #tpu.dot_dimension_numbers<[1], [0], [0], [1], [0, 0, 1, 1], [], []>} : vector<2x32xbf16>, vector<32x128xbf16>, vector<2x128xf32> -> vector<2x128xf32>
    %152 = arith.addf %149, %151 : vector<2x128xf32>
    %153 = vector.extract_strided_slice %152 {offsets = [0, 0], sizes = [2, 32], strides = [1, 1]} : vector<2x128xf32> to vector<2x32xf32>
    %cst_63 = arith.constant 5.000000e-01 : f32
    %154 = vector.broadcast %cst_63 : f32 to vector<2x32xf32>
    %155 = arith.mulf %154, %153 : vector<2x32xf32>
    %156 = math.tanh %155 : vector<2x32xf32>
    %cst_64 = arith.constant 5.000000e-01 : f32
    %157 = vector.broadcast %cst_64 : f32 to vector<2x32xf32>
    %158 = arith.mulf %157, %156 : vector<2x32xf32>
    %cst_65 = arith.constant 5.000000e-01 : f32
    %159 = vector.broadcast %cst_65 : f32 to vector<2x32xf32>
    %160 = arith.addf %158, %159 : vector<2x32xf32>
    %161 = vector.extract_strided_slice %152 {offsets = [0, 32], sizes = [2, 32], strides = [1, 1]} : vector<2x128xf32> to vector<2x32xf32>
    %cst_66 = arith.constant 5.000000e-01 : f32
    %162 = vector.broadcast %cst_66 : f32 to vector<2x32xf32>
    %163 = arith.mulf %162, %161 : vector<2x32xf32>
    %164 = math.tanh %163 : vector<2x32xf32>
    %cst_67 = arith.constant 5.000000e-01 : f32
    %165 = vector.broadcast %cst_67 : f32 to vector<2x32xf32>
    %166 = arith.mulf %165, %164 : vector<2x32xf32>
    %cst_68 = arith.constant 5.000000e-01 : f32
    %167 = vector.broadcast %cst_68 : f32 to vector<2x32xf32>
    %168 = arith.addf %166, %167 : vector<2x32xf32>
    %169 = vector.extract_strided_slice %152 {offsets = [0, 64], sizes = [2, 32], strides = [1, 1]} : vector<2x128xf32> to vector<2x32xf32>
    %170 = math.tanh %169 : vector<2x32xf32>
    %171 = vector.extract_strided_slice %152 {offsets = [0, 96], sizes = [2, 32], strides = [1, 1]} : vector<2x128xf32> to vector<2x32xf32>
    %cst_69 = arith.constant 5.000000e-01 : f32
    %172 = vector.broadcast %cst_69 : f32 to vector<2x32xf32>
    %173 = arith.mulf %172, %171 : vector<2x32xf32>
    %174 = math.tanh %173 : vector<2x32xf32>
    %cst_70 = arith.constant 5.000000e-01 : f32
    %175 = vector.broadcast %cst_70 : f32 to vector<2x32xf32>
    %176 = arith.mulf %175, %174 : vector<2x32xf32>
    %cst_71 = arith.constant 5.000000e-01 : f32
    %177 = vector.broadcast %cst_71 : f32 to vector<2x32xf32>
    %178 = arith.addf %176, %177 : vector<2x32xf32>
    %179 = arith.mulf %168, %146 : vector<2x32xf32>
    %180 = arith.mulf %160, %170 : vector<2x32xf32>
    %181 = arith.addf %179, %180 : vector<2x32xf32>
    %182 = math.tanh %181 : vector<2x32xf32>
    %183 = arith.mulf %178, %182 : vector<2x32xf32>
    %c0_i32_72 = arith.constant 0 : i32
    %184 = arith.addi %19, %c0_i32_72 : i32
    %c3_i32 = arith.constant 3 : i32
    %185 = arith.addi %184, %c3_i32 : i32
    %186 = arith.cmpi slt, %185, %18 : i32
    %187 = arith.select %186, %183, %145 : vector<2x32xf32>
    %188 = arith.select %186, %181, %146 : vector<2x32xf32>
    %189 = vector.shape_cast %187 : vector<2x32xf32> to vector<1x2x32xf32>
    %c0_73 = arith.constant 0 : index
    %c6 = arith.constant 6 : index
    %c0_74 = arith.constant 0 : index
    %190 = vector.load %arg10[%c0_73, %c6, %c0_74] : memref<1x16x32xf32, #tpu.memory_space<vmem>>, vector<1x2x32xf32>
    tpu.vector_store %arg10[%c0_73, %c6, %c0_74], %189 {strides = array<i32>} : memref<1x16x32xf32, #tpu.memory_space<vmem>>, vector<1x2x32xf32>,
    %191 = vector.extract_strided_slice %22 {offsets = [8, 0], sizes = [2, 128], strides = [1, 1]} : vector<16x128xf32> to vector<2x128xf32>
    %192 = arith.truncf %187 : vector<2x32xf32> to vector<2x32xbf16>
    %cst_75 = arith.constant dense<0.000000e+00> : vector<2x128xf32>
    %193 = tpu.matmul %192, %16, %cst_75 {dimension_numbers = #tpu.dot_dimension_numbers<[1], [0], [0], [1], [0, 0, 1, 1], [], []>} : vector<2x32xbf16>, vector<32x128xbf16>, vector<2x128xf32> -> vector<2x128xf32>
    %194 = arith.addf %191, %193 : vector<2x128xf32>
    %195 = vector.extract_strided_slice %194 {offsets = [0, 0], sizes = [2, 32], strides = [1, 1]} : vector<2x128xf32> to vector<2x32xf32>
    %cst_76 = arith.constant 5.000000e-01 : f32
    %196 = vector.broadcast %cst_76 : f32 to vector<2x32xf32>
    %197 = arith.mulf %196, %195 : vector<2x32xf32>
    %198 = math.tanh %197 : vector<2x32xf32>
    %cst_77 = arith.constant 5.000000e-01 : f32
    %199 = vector.broadcast %cst_77 : f32 to vector<2x32xf32>
    %200 = arith.mulf %199, %198 : vector<2x32xf32>
    %cst_78 = arith.constant 5.000000e-01 : f32
    %201 = vector.broadcast %cst_78 : f32 to vector<2x32xf32>
    %202 = arith.addf %200, %201 : vector<2x32xf32>
    %203 = vector.extract_strided_slice %194 {offsets = [0, 32], sizes = [2, 32], strides = [1, 1]} : vector<2x128xf32> to vector<2x32xf32>
    %cst_79 = arith.constant 5.000000e-01 : f32
    %204 = vector.broadcast %cst_79 : f32 to vector<2x32xf32>
    %205 = arith.mulf %204, %203 : vector<2x32xf32>
    %206 = math.tanh %205 : vector<2x32xf32>
    %cst_80 = arith.constant 5.000000e-01 : f32
    %207 = vector.broadcast %cst_80 : f32 to vector<2x32xf32>
    %208 = arith.mulf %207, %206 : vector<2x32xf32>
    %cst_81 = arith.constant 5.000000e-01 : f32
    %209 = vector.broadcast %cst_81 : f32 to vector<2x32xf32>
    %210 = arith.addf %208, %209 : vector<2x32xf32>
    %211 = vector.extract_strided_slice %194 {offsets = [0, 64], sizes = [2, 32], strides = [1, 1]} : vector<2x128xf32> to vector<2x32xf32>
    %212 = math.tanh %211 : vector<2x32xf32>
    %213 = vector.extract_strided_slice %194 {offsets = [0, 96], sizes = [2, 32], strides = [1, 1]} : vector<2x128xf32> to vector<2x32xf32>
    %cst_82 = arith.constant 5.000000e-01 : f32
    %214 = vector.broadcast %cst_82 : f32 to vector<2x32xf32>
    %215 = arith.mulf %214, %213 : vector<2x32xf32>
    %216 = math.tanh %215 : vector<2x32xf32>
    %cst_83 = arith.constant 5.000000e-01 : f32
    %217 = vector.broadcast %cst_83 : f32 to vector<2x32xf32>
    %218 = arith.mulf %217, %216 : vector<2x32xf32>
    %cst_84 = arith.constant 5.000000e-01 : f32
    %219 = vector.broadcast %cst_84 : f32 to vector<2x32xf32>
    %220 = arith.addf %218, %219 : vector<2x32xf32>
    %221 = arith.mulf %210, %188 : vector<2x32xf32>
    %222 = arith.mulf %202, %212 : vector<2x32xf32>
    %223 = arith.addf %221, %222 : vector<2x32xf32>
    %224 = math.tanh %223 : vector<2x32xf32>
    %225 = arith.mulf %220, %224 : vector<2x32xf32>
    %c0_i32_85 = arith.constant 0 : i32
    %226 = arith.addi %19, %c0_i32_85 : i32
    %c4_i32 = arith.constant 4 : i32
    %227 = arith.addi %226, %c4_i32 : i32
    %228 = arith.cmpi slt, %227, %18 : i32
    %229 = arith.select %228, %225, %187 : vector<2x32xf32>
    %230 = arith.select %228, %223, %188 : vector<2x32xf32>
    %231 = vector.shape_cast %229 : vector<2x32xf32> to vector<1x2x32xf32>
    %c0_86 = arith.constant 0 : index
    %c8 = arith.constant 8 : index
    %c0_87 = arith.constant 0 : index
    %232 = vector.load %arg10[%c0_86, %c8, %c0_87] : memref<1x16x32xf32, #tpu.memory_space<vmem>>, vector<1x2x32xf32>
    tpu.vector_store %arg10[%c0_86, %c8, %c0_87], %231 {strides = array<i32>} : memref<1x16x32xf32, #tpu.memory_space<vmem>>, vector<1x2x32xf32>,
    %233 = vector.extract_strided_slice %22 {offsets = [10, 0], sizes = [2, 128], strides = [1, 1]} : vector<16x128xf32> to vector<2x128xf32>
    %234 = arith.truncf %229 : vector<2x32xf32> to vector<2x32xbf16>
    %cst_88 = arith.constant dense<0.000000e+00> : vector<2x128xf32>
    %235 = tpu.matmul %234, %16, %cst_88 {dimension_numbers = #tpu.dot_dimension_numbers<[1], [0], [0], [1], [0, 0, 1, 1], [], []>} : vector<2x32xbf16>, vector<32x128xbf16>, vector<2x128xf32> -> vector<2x128xf32>
    %236 = arith.addf %233, %235 : vector<2x128xf32>
    %237 = vector.extract_strided_slice %236 {offsets = [0, 0], sizes = [2, 32], strides = [1, 1]} : vector<2x128xf32> to vector<2x32xf32>
    %cst_89 = arith.constant 5.000000e-01 : f32
    %238 = vector.broadcast %cst_89 : f32 to vector<2x32xf32>
    %239 = arith.mulf %238, %237 : vector<2x32xf32>
    %240 = math.tanh %239 : vector<2x32xf32>
    %cst_90 = arith.constant 5.000000e-01 : f32
    %241 = vector.broadcast %cst_90 : f32 to vector<2x32xf32>
    %242 = arith.mulf %241, %240 : vector<2x32xf32>
    %cst_91 = arith.constant 5.000000e-01 : f32
    %243 = vector.broadcast %cst_91 : f32 to vector<2x32xf32>
    %244 = arith.addf %242, %243 : vector<2x32xf32>
    %245 = vector.extract_strided_slice %236 {offsets = [0, 32], sizes = [2, 32], strides = [1, 1]} : vector<2x128xf32> to vector<2x32xf32>
    %cst_92 = arith.constant 5.000000e-01 : f32
    %246 = vector.broadcast %cst_92 : f32 to vector<2x32xf32>
    %247 = arith.mulf %246, %245 : vector<2x32xf32>
    %248 = math.tanh %247 : vector<2x32xf32>
    %cst_93 = arith.constant 5.000000e-01 : f32
    %249 = vector.broadcast %cst_93 : f32 to vector<2x32xf32>
    %250 = arith.mulf %249, %248 : vector<2x32xf32>
    %cst_94 = arith.constant 5.000000e-01 : f32
    %251 = vector.broadcast %cst_94 : f32 to vector<2x32xf32>
    %252 = arith.addf %250, %251 : vector<2x32xf32>
    %253 = vector.extract_strided_slice %236 {offsets = [0, 64], sizes = [2, 32], strides = [1, 1]} : vector<2x128xf32> to vector<2x32xf32>
    %254 = math.tanh %253 : vector<2x32xf32>
    %255 = vector.extract_strided_slice %236 {offsets = [0, 96], sizes = [2, 32], strides = [1, 1]} : vector<2x128xf32> to vector<2x32xf32>
    %cst_95 = arith.constant 5.000000e-01 : f32
    %256 = vector.broadcast %cst_95 : f32 to vector<2x32xf32>
    %257 = arith.mulf %256, %255 : vector<2x32xf32>
    %258 = math.tanh %257 : vector<2x32xf32>
    %cst_96 = arith.constant 5.000000e-01 : f32
    %259 = vector.broadcast %cst_96 : f32 to vector<2x32xf32>
    %260 = arith.mulf %259, %258 : vector<2x32xf32>
    %cst_97 = arith.constant 5.000000e-01 : f32
    %261 = vector.broadcast %cst_97 : f32 to vector<2x32xf32>
    %262 = arith.addf %260, %261 : vector<2x32xf32>
    %263 = arith.mulf %252, %230 : vector<2x32xf32>
    %264 = arith.mulf %244, %254 : vector<2x32xf32>
    %265 = arith.addf %263, %264 : vector<2x32xf32>
    %266 = math.tanh %265 : vector<2x32xf32>
    %267 = arith.mulf %262, %266 : vector<2x32xf32>
    %c0_i32_98 = arith.constant 0 : i32
    %268 = arith.addi %19, %c0_i32_98 : i32
    %c5_i32 = arith.constant 5 : i32
    %269 = arith.addi %268, %c5_i32 : i32
    %270 = arith.cmpi slt, %269, %18 : i32
    %271 = arith.select %270, %267, %229 : vector<2x32xf32>
    %272 = arith.select %270, %265, %230 : vector<2x32xf32>
    %273 = vector.shape_cast %271 : vector<2x32xf32> to vector<1x2x32xf32>
    %c0_99 = arith.constant 0 : index
    %c10 = arith.constant 10 : index
    %c0_100 = arith.constant 0 : index
    %274 = vector.load %arg10[%c0_99, %c10, %c0_100] : memref<1x16x32xf32, #tpu.memory_space<vmem>>, vector<1x2x32xf32>
    tpu.vector_store %arg10[%c0_99, %c10, %c0_100], %273 {strides = array<i32>} : memref<1x16x32xf32, #tpu.memory_space<vmem>>, vector<1x2x32xf32>,
    %275 = vector.extract_strided_slice %22 {offsets = [12, 0], sizes = [2, 128], strides = [1, 1]} : vector<16x128xf32> to vector<2x128xf32>
    %276 = arith.truncf %271 : vector<2x32xf32> to vector<2x32xbf16>
    %cst_101 = arith.constant dense<0.000000e+00> : vector<2x128xf32>
    %277 = tpu.matmul %276, %16, %cst_101 {dimension_numbers = #tpu.dot_dimension_numbers<[1], [0], [0], [1], [0, 0, 1, 1], [], []>} : vector<2x32xbf16>, vector<32x128xbf16>, vector<2x128xf32> -> vector<2x128xf32>
    %278 = arith.addf %275, %277 : vector<2x128xf32>
    %279 = vector.extract_strided_slice %278 {offsets = [0, 0], sizes = [2, 32], strides = [1, 1]} : vector<2x128xf32> to vector<2x32xf32>
    %cst_102 = arith.constant 5.000000e-01 : f32
    %280 = vector.broadcast %cst_102 : f32 to vector<2x32xf32>
    %281 = arith.mulf %280, %279 : vector<2x32xf32>
    %282 = math.tanh %281 : vector<2x32xf32>
    %cst_103 = arith.constant 5.000000e-01 : f32
    %283 = vector.broadcast %cst_103 : f32 to vector<2x32xf32>
    %284 = arith.mulf %283, %282 : vector<2x32xf32>
    %cst_104 = arith.constant 5.000000e-01 : f32
    %285 = vector.broadcast %cst_104 : f32 to vector<2x32xf32>
    %286 = arith.addf %284, %285 : vector<2x32xf32>
    %287 = vector.extract_strided_slice %278 {offsets = [0, 32], sizes = [2, 32], strides = [1, 1]} : vector<2x128xf32> to vector<2x32xf32>
    %cst_105 = arith.constant 5.000000e-01 : f32
    %288 = vector.broadcast %cst_105 : f32 to vector<2x32xf32>
    %289 = arith.mulf %288, %287 : vector<2x32xf32>
    %290 = math.tanh %289 : vector<2x32xf32>
    %cst_106 = arith.constant 5.000000e-01 : f32
    %291 = vector.broadcast %cst_106 : f32 to vector<2x32xf32>
    %292 = arith.mulf %291, %290 : vector<2x32xf32>
    %cst_107 = arith.constant 5.000000e-01 : f32
    %293 = vector.broadcast %cst_107 : f32 to vector<2x32xf32>
    %294 = arith.addf %292, %293 : vector<2x32xf32>
    %295 = vector.extract_strided_slice %278 {offsets = [0, 64], sizes = [2, 32], strides = [1, 1]} : vector<2x128xf32> to vector<2x32xf32>
    %296 = math.tanh %295 : vector<2x32xf32>
    %297 = vector.extract_strided_slice %278 {offsets = [0, 96], sizes = [2, 32], strides = [1, 1]} : vector<2x128xf32> to vector<2x32xf32>
    %cst_108 = arith.constant 5.000000e-01 : f32
    %298 = vector.broadcast %cst_108 : f32 to vector<2x32xf32>
    %299 = arith.mulf %298, %297 : vector<2x32xf32>
    %300 = math.tanh %299 : vector<2x32xf32>
    %cst_109 = arith.constant 5.000000e-01 : f32
    %301 = vector.broadcast %cst_109 : f32 to vector<2x32xf32>
    %302 = arith.mulf %301, %300 : vector<2x32xf32>
    %cst_110 = arith.constant 5.000000e-01 : f32
    %303 = vector.broadcast %cst_110 : f32 to vector<2x32xf32>
    %304 = arith.addf %302, %303 : vector<2x32xf32>
    %305 = arith.mulf %294, %272 : vector<2x32xf32>
    %306 = arith.mulf %286, %296 : vector<2x32xf32>
    %307 = arith.addf %305, %306 : vector<2x32xf32>
    %308 = math.tanh %307 : vector<2x32xf32>
    %309 = arith.mulf %304, %308 : vector<2x32xf32>
    %c0_i32_111 = arith.constant 0 : i32
    %310 = arith.addi %19, %c0_i32_111 : i32
    %c6_i32 = arith.constant 6 : i32
    %311 = arith.addi %310, %c6_i32 : i32
    %312 = arith.cmpi slt, %311, %18 : i32
    %313 = arith.select %312, %309, %271 : vector<2x32xf32>
    %314 = arith.select %312, %307, %272 : vector<2x32xf32>
    %315 = vector.shape_cast %313 : vector<2x32xf32> to vector<1x2x32xf32>
    %c0_112 = arith.constant 0 : index
    %c12 = arith.constant 12 : index
    %c0_113 = arith.constant 0 : index
    %316 = vector.load %arg10[%c0_112, %c12, %c0_113] : memref<1x16x32xf32, #tpu.memory_space<vmem>>, vector<1x2x32xf32>
    tpu.vector_store %arg10[%c0_112, %c12, %c0_113], %315 {strides = array<i32>} : memref<1x16x32xf32, #tpu.memory_space<vmem>>, vector<1x2x32xf32>,
    %317 = vector.extract_strided_slice %22 {offsets = [14, 0], sizes = [2, 128], strides = [1, 1]} : vector<16x128xf32> to vector<2x128xf32>
    %318 = arith.truncf %313 : vector<2x32xf32> to vector<2x32xbf16>
    %cst_114 = arith.constant dense<0.000000e+00> : vector<2x128xf32>
    %319 = tpu.matmul %318, %16, %cst_114 {dimension_numbers = #tpu.dot_dimension_numbers<[1], [0], [0], [1], [0, 0, 1, 1], [], []>} : vector<2x32xbf16>, vector<32x128xbf16>, vector<2x128xf32> -> vector<2x128xf32>
    %320 = arith.addf %317, %319 : vector<2x128xf32>
    %321 = vector.extract_strided_slice %320 {offsets = [0, 0], sizes = [2, 32], strides = [1, 1]} : vector<2x128xf32> to vector<2x32xf32>
    %cst_115 = arith.constant 5.000000e-01 : f32
    %322 = vector.broadcast %cst_115 : f32 to vector<2x32xf32>
    %323 = arith.mulf %322, %321 : vector<2x32xf32>
    %324 = math.tanh %323 : vector<2x32xf32>
    %cst_116 = arith.constant 5.000000e-01 : f32
    %325 = vector.broadcast %cst_116 : f32 to vector<2x32xf32>
    %326 = arith.mulf %325, %324 : vector<2x32xf32>
    %cst_117 = arith.constant 5.000000e-01 : f32
    %327 = vector.broadcast %cst_117 : f32 to vector<2x32xf32>
    %328 = arith.addf %326, %327 : vector<2x32xf32>
    %329 = vector.extract_strided_slice %320 {offsets = [0, 32], sizes = [2, 32], strides = [1, 1]} : vector<2x128xf32> to vector<2x32xf32>
    %cst_118 = arith.constant 5.000000e-01 : f32
    %330 = vector.broadcast %cst_118 : f32 to vector<2x32xf32>
    %331 = arith.mulf %330, %329 : vector<2x32xf32>
    %332 = math.tanh %331 : vector<2x32xf32>
    %cst_119 = arith.constant 5.000000e-01 : f32
    %333 = vector.broadcast %cst_119 : f32 to vector<2x32xf32>
    %334 = arith.mulf %333, %332 : vector<2x32xf32>
    %cst_120 = arith.constant 5.000000e-01 : f32
    %335 = vector.broadcast %cst_120 : f32 to vector<2x32xf32>
    %336 = arith.addf %334, %335 : vector<2x32xf32>
    %337 = vector.extract_strided_slice %320 {offsets = [0, 64], sizes = [2, 32], strides = [1, 1]} : vector<2x128xf32> to vector<2x32xf32>
    %338 = math.tanh %337 : vector<2x32xf32>
    %339 = vector.extract_strided_slice %320 {offsets = [0, 96], sizes = [2, 32], strides = [1, 1]} : vector<2x128xf32> to vector<2x32xf32>
    %cst_121 = arith.constant 5.000000e-01 : f32
    %340 = vector.broadcast %cst_121 : f32 to vector<2x32xf32>
    %341 = arith.mulf %340, %339 : vector<2x32xf32>
    %342 = math.tanh %341 : vector<2x32xf32>
    %cst_122 = arith.constant 5.000000e-01 : f32
    %343 = vector.broadcast %cst_122 : f32 to vector<2x32xf32>
    %344 = arith.mulf %343, %342 : vector<2x32xf32>
    %cst_123 = arith.constant 5.000000e-01 : f32
    %345 = vector.broadcast %cst_123 : f32 to vector<2x32xf32>
    %346 = arith.addf %344, %345 : vector<2x32xf32>
    %347 = arith.mulf %336, %314 : vector<2x32xf32>
    %348 = arith.mulf %328, %338 : vector<2x32xf32>
    %349 = arith.addf %347, %348 : vector<2x32xf32>
    %350 = math.tanh %349 : vector<2x32xf32>
    %351 = arith.mulf %346, %350 : vector<2x32xf32>
    %c0_i32_124 = arith.constant 0 : i32
    %352 = arith.addi %19, %c0_i32_124 : i32
    %c7_i32 = arith.constant 7 : i32
    %353 = arith.addi %352, %c7_i32 : i32
    %354 = arith.cmpi slt, %353, %18 : i32
    %355 = arith.select %354, %351, %313 : vector<2x32xf32>
    %356 = arith.select %354, %349, %314 : vector<2x32xf32>
    %357 = vector.shape_cast %355 : vector<2x32xf32> to vector<1x2x32xf32>
    %c0_125 = arith.constant 0 : index
    %c14 = arith.constant 14 : index
    %c0_126 = arith.constant 0 : index
    %358 = vector.load %arg10[%c0_125, %c14, %c0_126] : memref<1x16x32xf32, #tpu.memory_space<vmem>>, vector<1x2x32xf32>
    tpu.vector_store %arg10[%c0_125, %c14, %c0_126], %357 {strides = array<i32>} : memref<1x16x32xf32, #tpu.memory_space<vmem>>, vector<1x2x32xf32>,
    %c0_127 = arith.constant 0 : index
    %c0_128 = arith.constant 0 : index
    %359 = vector.load %arg14[%c0_127, %c0_128] : memref<2x32xf32, #tpu.memory_space<vmem>>, vector<2x32xf32>
    tpu.vector_store %arg14[%c0_127, %c0_128], %355 {strides = array<i32>} : memref<2x32xf32, #tpu.memory_space<vmem>>, vector<2x32xf32>,
    %c0_129 = arith.constant 0 : index
    %c0_130 = arith.constant 0 : index
    %360 = vector.load %arg15[%c0_129, %c0_130] : memref<2x32xf32, #tpu.memory_space<vmem>>, vector<2x32xf32>
    tpu.vector_store %arg15[%c0_129, %c0_130], %356 {strides = array<i32>} : memref<2x32xf32, #tpu.memory_space<vmem>>, vector<2x32xf32>,
    %c0_131 = arith.constant 0 : index
    %c0_132 = arith.constant 0 : index
    %361 = vector.load %arg11[%c0_131, %c0_132] : memref<2x32xf32, #tpu.memory_space<vmem>>, vector<2x32xf32>
    tpu.vector_store %arg11[%c0_131, %c0_132], %355 {strides = array<i32>} : memref<2x32xf32, #tpu.memory_space<vmem>>, vector<2x32xf32>,
    %c0_133 = arith.constant 0 : index
    %c0_134 = arith.constant 0 : index
    %362 = vector.load %arg12[%c0_133, %c0_134] : memref<2x32xf32, #tpu.memory_space<vmem>>, vector<2x32xf32>
    tpu.vector_store %arg12[%c0_133, %c0_134], %356 {strides = array<i32>} : memref<2x32xf32, #tpu.memory_space<vmem>>, vector<2x32xf32>,
    return
  }
  func.func @transform_0(%arg0: i32, %arg1: i32, %arg2: memref<2xi32, #tpu.memory_space<smem>>, %arg3: memref<2xi32, #tpu.memory_space<smem>>) -> (i32, i32, i32) {
    %c0_i32 = arith.constant 0 : i32
    %c0_i32_0 = arith.constant 0 : i32
    return %arg0, %arg1, %c0_i32 : i32, i32, i32
  }
  func.func @transform_1(%arg0: i32, %arg1: i32, %arg2: memref<2xi32, #tpu.memory_space<smem>>, %arg3: memref<2xi32, #tpu.memory_space<smem>>) -> (i32, i32, i32) {
    %0 = arith.index_cast %arg0 : i32 to index
    %1 = memref.load %arg2[%0] : memref<2xi32, #tpu.memory_space<smem>>
    %c0_i32 = arith.constant 0 : i32
    %c0_i32_0 = arith.constant 0 : i32
    %c0_i32_1 = arith.constant 0 : i32
    return %1, %c0_i32, %c0_i32_0 : i32, i32, i32
  }
  func.func @transform_2(%arg0: i32, %arg1: i32, %arg2: memref<2xi32, #tpu.memory_space<smem>>, %arg3: memref<2xi32, #tpu.memory_space<smem>>) -> (i32, i32, i32) {
    %0 = arith.index_cast %arg0 : i32 to index
    %1 = memref.load %arg2[%0] : memref<2xi32, #tpu.memory_space<smem>>
    %c0_i32 = arith.constant 0 : i32
    %c0_i32_0 = arith.constant 0 : i32
    %c0_i32_1 = arith.constant 0 : i32
    return %1, %c0_i32, %c0_i32_0 : i32, i32, i32
  }
  func.func @transform_3(%arg0: i32, %arg1: i32, %arg2: memref<2xi32, #tpu.memory_space<smem>>, %arg3: memref<2xi32, #tpu.memory_space<smem>>) -> (i32, i32, i32) {
    %0 = arith.index_cast %arg0 : i32 to index
    %1 = memref.load %arg2[%0] : memref<2xi32, #tpu.memory_space<smem>>
    %c0_i32 = arith.constant 0 : i32
    %c0_i32_0 = arith.constant 0 : i32
    %c0_i32_1 = arith.constant 0 : i32
    return %1, %c0_i32, %c0_i32_0 : i32, i32, i32
  }
  func.func @transform_4(%arg0: i32, %arg1: i32, %arg2: memref<2xi32, #tpu.memory_space<smem>>, %arg3: memref<2xi32, #tpu.memory_space<smem>>) -> (i32, i32) {
    %c0_i32 = arith.constant 0 : i32
    %c0_i32_0 = arith.constant 0 : i32
    %c0_i32_1 = arith.constant 0 : i32
    return %c0_i32, %c0_i32_0 : i32, i32
  }
  func.func @transform_5(%arg0: i32, %arg1: i32, %arg2: memref<2xi32, #tpu.memory_space<smem>>, %arg3: memref<2xi32, #tpu.memory_space<smem>>) -> (i32, i32) {
    %c0_i32 = arith.constant 0 : i32
    %c0_i32_0 = arith.constant 0 : i32
    %c0_i32_1 = arith.constant 0 : i32
    return %c0_i32, %c0_i32_0 : i32, i32
  }
  func.func @transform_6(%arg0: i32, %arg1: i32, %arg2: memref<2xi32, #tpu.memory_space<smem>>, %arg3: memref<2xi32, #tpu.memory_space<smem>>) -> (i32, i32, i32) {
    %c0_i32 = arith.constant 0 : i32
    %c0_i32_0 = arith.constant 0 : i32
    return %arg0, %arg1, %c0_i32 : i32, i32, i32
  }
  func.func @transform_7(%arg0: i32, %arg1: i32, %arg2: memref<2xi32, #tpu.memory_space<smem>>, %arg3: memref<2xi32, #tpu.memory_space<smem>>) -> (i32, i32) {
    %c0_i32 = arith.constant 0 : i32
    %c0_i32_0 = arith.constant 0 : i32
    %c0_i32_1 = arith.constant 0 : i32
    return %c0_i32, %c0_i32_0 : i32, i32
  }
  func.func @transform_8(%arg0: i32, %arg1: i32, %arg2: memref<2xi32, #tpu.memory_space<smem>>, %arg3: memref<2xi32, #tpu.memory_space<smem>>) -> (i32, i32) {
    %c0_i32 = arith.constant 0 : i32
    %c0_i32_0 = arith.constant 0 : i32
    %c0_i32_1 = arith.constant 0 : i32
    return %c0_i32, %c0_i32_0 : i32, i32
  }
}

</mosaic_0001>

<bundles_post_ra>
// kernel: _lambda_.1
= control target key start
LH: loop header
LB: loop body
LE: loop exit
PB: predicated region body
PF: predicated region fallthrough
CT: control target
= control target key end

     0   :  { %s2212_s0 = inlined_call_operand.vmem [shape: s32[2], index: 0, kind: input, shape index: {}]   ;;  %s2213_s2 = inlined_call_operand.vmem [shape: bf16[2,16,16], index: 2, kind: input, shape index: {}]   ;;  %s2214_s3 = inlined_call_operand.vmem [shape: bf16[2,16,128], index: 3, kind: input, shape index: {}]   ;;  %s2215_s4 = inlined_call_operand.vmem [shape: bf16[2,32,128], index: 4, kind: input, shape index: {}]   ;;  %s2216_s5 = inlined_call_operand.vmem [shape: f32[2,1,128], index: 5, kind: input, shape index: {}]   ;;  %s2217_s6 = inlined_call_operand.vmem [shape: f32[2,32], index: 6, kind: input, shape index: {}, may-alias: {6,7}]   ;;  %s2218_s7 = inlined_call_operand.vmem [shape: f32[2,32], index: 7, kind: input, shape index: {}, may-alias: {6,7}]   ;;  %s2219_s8 = inlined_call_operand.vmem [shape: f32[2,16,32], index: 8, kind: output, shape index: {0}]   ;;  %s2220_s9 = inlined_call_operand.hbm [shape: f32[2,32], index: 9, kind: output, shape index: {1}]   ;;  %s2221_s10 = inlined_call_operand.hbm [shape: f32[2,32], index: 10, kind: output, shape index: {2}]   ;;  %s2222_s1 = inlined_call_operand.vmem [shape: s32[2], index: 1, kind: input, shape index: {}]  }
   0x1   :  { %s16_s15 = sshll.u32 %s2212_s0, 4  ;;  %s20_s18 = sshll.u32 %s2222_s1, 4  ;;  %s17_s15 = int_to_ptr.vmem [resolvable:$true] %s16_s15  ;;  %s21_s18 = int_to_ptr.vmem [resolvable:$true] %s20_s18 }
   0x2   :  { %s1669_s19 = scalar_lea.vmem %s17_s15, 16  ;;  %p1674_p1 = scmp.lt.s32.totalorder %s17_s15, %s17_s15 }
   0x3   :  { %p1670_p0 = scmp.ne.s32.totalorder %s17_s15, %s1669_s19  ;;  %p1675_p2 = scmp.lt.s32.totalorder %s1669_s19, %s1669_s19 }
   0x5   :  { %p1676_p3 = por %p1675_p2, %p1674_p1 }
   0x7   :  { %p1677_p4 = pnand %p1676_p3, %p1670_p0 }
   0x9   :  { %1680 = shalt.err (!%p1677_p4)  }
   0xa   :  { %s1779_s20 = smov [#allocation6]   ;;  %s1681_s21 = scalar_lea.vmem %s21_s18, 16 }
   0xb   :  { %19 = dma.vmem_to_smem %s17_s15, 16, %s1779_s20, [#allocation5] }
   0xc   :  { %p1682_p5 = scmp.ne.s32.totalorder %s21_s18, %s1681_s21  ;;  %p1686_p6 = scmp.lt.s32.totalorder %s21_s18, %s21_s18 }
   0xd   :  { %p1687_p7 = scmp.lt.s32.totalorder %s1681_s21, %s1681_s21 }
   0xf   :  { %p1688_p8 = por %p1687_p7, %p1686_p6 }
  0x11   :  { %p1689_p9 = pnand %p1688_p8, %p1682_p5 }
  0x13   :  { %1692 = shalt.err (!%p1689_p9)  }
  0x14   :  { %s1780_s0 = smov [#allocation7]  }
  0x15   :  { %23 = dma.vmem_to_smem %s21_s18, 16, %s1780_s0, [#allocation5] }
  0x16   :  { %1757 = dma.done.wait [#allocation5], 32 }
  0x17   :  { %1758 = vsyncadd [#allocation5], 4294967264 }
  0x18   :  { %25 = sfence }
  0x19   :  { %26 = vsyncpa [#allocation9], 0 }
  0x1a   :  { %27 = vsyncpa [#allocation11], 0  ;;  %s1849_s1 = smov 0   ;;  %s1851_s22 = smov 0  }
  0x1b   :  { %s1853_s23 = smov 0  }
  0x1c LB: > { %s45_s25 = sadd.s32 1, %s1773_s22  ;;  %p1433_p11 = scmp.ge.s32.totalorder %s1777_s23, 1  ;;  %s1777_s23 = sphi %s1853_s23, %s33_s23   ;;  %s1773_s22 = sphi %s1851_s22, %s2240_s22   ;;  %s1769_s1 = sphi %s1849_s1, %s2239_s1  }
  0x1d   : > { %p47_p10 = scmp.ge.s32.totalorder %s45_s25, 2  ;;  %p332_p12 = scmp.lt.s32.totalorder %s1777_s23, 3 }
  0x1f   : > { %s2242_s25 = smov (%p47_p10, %s45_s25), 0  ;;  %p333_p13 = pnand %p1433_p11, %p332_p12 }
  0x20   : > { %p391_p0 = scmp.lt.s32.totalorder (!%p333_p13), %s1769_s1, 1  ;;  %s400_s26 = sld [smem:[#allocation6 + %s1769_s1]] (!%p333_p13) }
  0x21   : > { %336 = sbr.rel (%p333_p13) target bundleno = 5743 (0x166f), region = 44  ;;  %s407_s27 = sld [smem:[#allocation6 + %s1769_s1]] (!%p333_p13) }
  0x22   : > { %s414_s28 = sld [smem:[#allocation6 + %s1769_s1]] (!%p333_p13)  ;;  %p430_p1 = scmp.eq.s32.totalorder (!%p333_p13), %s1769_s1, 0 }
  0x26   : > { %p401_p2 = scmp.lt.s32.totalorder (!%p333_p13), %s400_s26, 1 }
  0x27   : > { %p408_p3 = scmp.lt.s32.totalorder (!%p333_p13), %s407_s27, 1 }
  0x28   : > { %s392_s29 = scalar_select %p391_p0, %s1769_s1, 1 }
  0x29   : > { %p415_p4 = scmp.lt.s32.totalorder %s414_s28, 1  ;;  %s2244_s26 = smov (!%p401_p2, %s400_s26), 1  ;;  %v436_v0 = vld [vmem:[%s2217_s6] sm:$0x3] (%p430_p1)  ;;  %vm437_vm0 = vcmask (%p430_p1), 254976  }
  0x2a   : > { %s1471_s30 = sshll.u32 %s392_s29, 3  ;;  %s1474_s11 = sshll.u32 %s392_s29, 4  ;;  %v439_v1 = vld [vmem:[%s2218_s7] sm:$0x3] (%p430_p1)  ;;  %438 = vst.msk [vmem:[#allocation3] sm:$0x3] (%p430_p1), %vm437_vm0, %v436_v0 }
  0x2b   : > { %s398_s14 = scalar_lea.vmem %s2213_s2, %s1471_s30  ;;  %s1882_s17 = scalar_lea.vmem %s2219_s8, %s1474_s11  ;;  %440 = vst.msk [vmem:[#allocation4] sm:$0x3] (%p430_p1), %vm437_vm0, %v439_v1 }
  0x2c   : > { %s2246_s27 = smov (!%p408_p3, %s407_s27), 1  ;;  %s1472_s18 = sshll.u32 %s2244_s26, 3 }
  0x2d   : > { %s405_s21 = scalar_lea.vmem %s2214_s3, %s1472_s18  ;;  %s1473_s0 = sshll.u32 %s2246_s27, 4 }
  0x2e   : > { %s412_s30 = scalar_lea.vmem %s2215_s4, %s1473_s0  ;;  %s2248_s28 = smov (!%p415_p4, %s414_s28), 1 }
  0x2f   : > { %s417_s13 = scalar_lea.vmem %s2216_s5, %s2248_s28  ;;  %435 = sbr.rel (!%p430_p1) target bundleno = 54 (0x36), region = 48 }
  0x36 PF: > { %v1617_v2 = vld [vmem:[%s405_s21] sm:$0xff]   ;;  %v1781_v3 = vmov 0.0   ;;  %vm1782_vm1 = vmmov 0   ;;  %vm463_vm2 = vcmask 130048   ;;  %v1911_v6 = vld [vmem:[%s412_s30 + $0x8] sm:$0xff]   ;;  %vm533_vm3 = vcmask 261120  }
  0x37   : > { %1502 = vmatprep.subr.bf16.mxu0 %v1781_v3  ;;  %1508 = vmatprep.subr.bf16.mxu1 %v1781_v3  ;;  %v1906_v4 = vld [vmem:[%s412_s30] sm:$0xff]   ;;  %s1783_s18 = smov 64   ;;  %s1784_s28 = smov 32   ;;  %vm618_vm11 = vcmask 254976   ;;  %vm801_vm12 = vcmask 259076   ;;  %vm893_vm14 = vcmask 261126  }
  0x38   : > { %1503 = vmatpush3.bf16.msra.mxu0 %v1617_v2  ;;  %1504 = vmatprep.mubr.msk.bf16.mxu0 %vm1782_vm1, %v1781_v3  ;;  %v1619_v5 = vld [vmem:[%s398_s14] sm:$0xff]   ;;  %s1785_s19 = smov 96   ;;  %s1948_s20 = sld [smem:[#allocation7 + %s1769_s1]]  ;;  %vm709_vm15 = vcmask 257026  }
  0x39   : > { %1509 = vmatpush3.bf16.msra.mxu1 %v1906_v4  ;;  %1512 = vmatprep.mubr.msk.bf16.mxu1 %vm1782_vm1, %v1781_v3  ;;  %v516_v7 = vld [vmem:[#allocation3] sm:$0x3]  ;;  %v517_v22 = vld [vmem:[#allocation4] sm:$0x3]  ;;  %s1786_s26 = smov [#allocation10]   ;;  %s2237_s27 = sadd.s32 4294967295, %s1777_s23  }
  0x3a   : > { %1510 = vmatprep.subr.bf16.mxu1 %v1781_v3  ;;  %1516 = vmatprep.subr.bf16.mxu0 %v1781_v3  ;;  %v520_v8 = vpack.c.bf16 %v516_v7, %v516_v7  ;;  %v1443_v9 = vld [vmem:[%s417_s13] ss:$0 sm:$0xff]  ;;  %s1294_s15 = sshll.u32 %s1786_s26, 4  ;;  %p2138_p13 = scmp.eq.s32.totalorder %s2237_s27, 1  ;;  %s1295_s15 = int_to_ptr.vmem [resolvable:$true] %s1294_s15 }
  0x3b   : > { %1505 = vmatmul.mubr.msk.bf16.vlgmr.msra.gmra.mrb[0].mxu0 %vm463_vm2, %v1619_v5  ;;  %s1693_s24 = scalar_lea.vmem %s1295_s15, 32  ;;  %p1700_p3 = scmp.lt.s32.totalorder %s1295_s15, %s1295_s15 }
  0x3c   : > { %1517 = vmatpush3.bf16.msra.mxu0 %v1906_v4  ;;  %1520 = vmatprep.mubr.msk.bf16.mxu0 %vm1782_vm1, %v1781_v3  ;;  %p1694_p0 = scmp.ne.s32.totalorder %s1295_s15, %s1693_s24  ;;  %p1701_p4 = scmp.lt.s32.totalorder %s1693_s24, %s1693_s24 }
  0x3d   : > { %1511 = vmatpush3.bf16.msra.mxu1 %v1911_v6  ;;  %1518 = vmatprep.subr.bf16.mxu0 %v1781_v3 }
  0x3e   : > { %1524 = vmatprep.subr.bf16.mxu1 %v1781_v3  ;;  %p1450_p5 = scmp.gt.s32.totalorder %s1948_s20, 0  ;;  %p1452_p6 = scmp.gt.s32.totalorder %s1948_s20, 1 }
  0x3f   : > { %p1454_p7 = scmp.gt.s32.totalorder %s1948_s20, 2  ;;  %p1456_p8 = scmp.gt.s32.totalorder %s1948_s20, 3 }
  0x40   : > { %1513 = vmatmul.mubr.msk.bf16.vlgmr.msra.gmra.mrb[0].mxu1 %vm533_vm3, %v520_v8  ;;  %1519 = vmatpush3.bf16.msra.mxu0 %v1911_v6  ;;  %s605_s21 = scalar_select %p1450_p5, 1, 0 }
  0x41   : > { %1525 = vmatpush3.bf16.msra.mxu1 %v1906_v4  ;;  %1528 = vmatprep.mubr.msk.bf16.mxu1 %vm1782_vm1, %v1781_v3  ;;  %s698_s1 = scalar_select %p1452_p6, 1, 0 }
  0x42   : > { %1526 = vmatprep.subr.bf16.mxu1 %v1781_v3  ;;  %1532 = vmatprep.subr.bf16.mxu0 %v1781_v3  ;;  %v606_v34 = vstv %s605_s21  ;;  %s790_s0 = scalar_select %p1454_p7, 1, 0 }
  0x43   : > { %vm1951_vm4 = vcmp.eq.s32.totalorder %v606_v34, 1  ;;  %v699_v61 = vstv %s698_s1  ;;  %s882_s29 = scalar_select %p1456_p8, 1, 0 }
  0x44   : > { %vm1977_vm5 = vcmp.eq.s32.totalorder %v699_v61, 1  ;;  %p1458_p9 = scmp.gt.s32.totalorder %s1948_s20, 4  ;;  %p1460_p10 = scmp.gt.s32.totalorder %s1948_s20, 5 }
  0x45   : > { %1527 = vmatpush3.bf16.msra.mxu1 %v1911_v6  ;;  %p1462_p11 = scmp.gt.s32.totalorder %s1948_s20, 6  ;;  %p1464_p12 = scmp.gt.s32.totalorder %s1948_s20, 7 }
  0x46   : > { %1540 = vmatprep.subr.bf16.mxu1 %v1781_v3  ;;  %s971_s30 = scalar_select %p1458_p9, 1, 0 }
  0x47   : > { %s1061_s11 = scalar_select %p1460_p10, 1, 0 }
  0x48   : > { %s1152_s12 = scalar_select %p1462_p11, 1, 0 }
  0x49   : > { %s1243_s13 = scalar_select %p1464_p12, 1, 0 }
  0x4a   : > { %p1695_p1 = pnand %p1694_p0, %p2138_p13  ;;  %p1702_p5 = por %p1701_p4, %p1700_p3 }
  0x4c   : > { %p1696_p2 = pneg %p1695_p1 }
  0x4e   : > { %p1703_p6 = pnand %p1702_p5, %p1696_p2 }
 0x10e   : > { %v501_v10 = vpop.f32.mrb[0].mxu0 }
 0x10f   : > { %v1506_v11 = vpop.f32.mrb[1].mxu0  ;;  %v1937_v12 = vadd.f32 %v1443_v9, %v501_v10 }
 0x110   : > { %v504_v13 = vpop.f32.mrb[2].mxu0 }
 0x111   : > { %v1939_v14 = vadd.f32 %v1443_v9, %v504_v13  ;;  %v1507_v15 = vpop.f32.mrb[3].mxu0 }
 0x113   : > { %v571_v16 = vpop.f32.mrb[0].mxu1 }
 0x114   : > { %v577_v17 = vadd.f32 %v571_v16, %v1937_v12  ;;  %v1514_v18 = vpop.f32.mrb[1].mxu1 }
 0x115   : > { %v574_v19 = vpop.f32.mrb[2].mxu1 }
 0x116   : > { %1621 = vtanh.f32 %v577_v17  ;;  %v1515_v20 = vpop.f32.mrb[3].mxu1  ;;  %v578_v23 = vmul.f32 0.5, %v577_v17 }
 0x118   : > { %1623 = vtanh.f32 %v578_v23 }
 0x120   : > { %v1622_v21 = vpop.eup %1621 }
 0x121   : > { %589 = vrot.lane.b32.xlu0 %v1622_v21, %s1783_s18 }
 0x122   : > { %v1624_v24 = vpop.eup %1623 }
 0x123   : > { %v580_v25 = vmul.f32 0.5, %v1624_v24 }
 0x125   : > { %584 = vrot.lane.b32.xlu0 %v517_v22, %s1784_s28  ;;  %v581_v26 = vadd.f32 0.5, %v580_v25 }
 0x129   : > { %609 = vrot.lane.b32.xlu0 %v516_v7, %s1785_s19 }
 0x193   : > { %v590_v27 = vpop.permute.xlu0 %589 }
 0x194   : > { %v592_v28 = vmul.f32 %v590_v27, %v581_v26 }
 0x196   : > { %594 = vrot.lane.b32.xlu1 %v592_v28, %s1784_s28 }
 0x197   : > { %v585_v29 = vpop.permute.xlu0 %584 }
 0x198   : > { %v587_v30 = vmul.f32 %v585_v29, %v581_v26 }
 0x19b   : > { %v610_v36 = vpop.permute.xlu0 %609 }
 0x208   : > { %v595_v31 = vpop.permute.xlu1 %594 }
 0x209   : > { %v597_v32 = vadd.f32 %v595_v31, %v587_v30  ;;  %v791_v30 = vstv %s790_s0 }
 0x20a   : > { %vm2003_vm6 = vcmp.eq.s32.totalorder %v791_v30, 1 }
 0x20b   : > { %1625 = vtanh.f32 %v597_v32  ;;  %v613_v55 = vsel %vm1951_vm4, %v597_v32, %v585_v29 }
 0x20c   : > { %v677_v56 = vrot.slane %v613_v55, 6 }
 0x215   : > { %v1626_v33 = vpop.eup %1625 }
 0x216   : > { %600 = vrot.lane.b32.xlu1 %v1626_v33, %s1783_s18 }
 0x288   : > { %v601_v35 = vpop.permute.xlu1 %600 }
 0x289   : > { %v603_v37 = vmul.f32 %v601_v35, %v581_v26 }
 0x28b   : > { %v1957_v39 = vsel %vm1951_vm4, %v603_v37, %v610_v36 }
 0x28c   : > { %v620_v40 = vpack.c.bf16 %v1957_v39, %v1957_v39  ;;  %v701_v63 = vrot.slane %v1957_v39, 6 }
 0x28e   : > { %622 = vrot.lane.b32.xlu1 %v620_v40, %s1784_s28 }
 0x300   : > { %v623_v41 = vpop.permute.xlu1 %622 }
 0x301   : > { %1521 = vmatmul.mubr.msk.bf16.vlgmr.msra.gmra.mrb[4].mxu0 %vm533_vm3, %v623_v41 }
 0x302   : > { %1533 = vmatpush3.bf16.msra.mxu0 %v1906_v4  ;;  %1536 = vmatprep.mubr.msk.bf16.mxu0 %vm1782_vm1, %v1781_v3 }
 0x303   : > { %1534 = vmatprep.subr.bf16.mxu0 %v1781_v3 }
 0x306   : > { %1535 = vmatpush3.bf16.msra.mxu0 %v1911_v6 }
 0x307   : > { %1548 = vmatprep.subr.bf16.mxu0 %v1781_v3 }
 0x3d4   : > { %v661_v42 = vpop.f32.mrb[4].mxu0 }
 0x3d5   : > { %v668_v43 = vrot.slane %v661_v42, 6  ;;  %v1522_v44 = vpop.f32.mrb[5].mxu0 }
 0x3d6   : > { %v664_v45 = vpop.f32.mrb[6].mxu0 }
 0x3d7   : > { %v670_v46 = vadd.f32 %v668_v43, %v1937_v12  ;;  %v1523_v47 = vpop.f32.mrb[7].mxu0 }
 0x3d9   : > { %1627 = vtanh.f32 %v670_v46  ;;  %v671_v49 = vmul.f32 0.5, %v670_v46 }
 0x3db   : > { %1629 = vtanh.f32 %v671_v49 }
 0x3e3   : > { %v1628_v48 = vpop.eup %1627 }
 0x3e4   : > { %681 = vrot.lane.b32.xlu0 %v1628_v48, %s1783_s18 }
 0x3e5   : > { %v1630_v50 = vpop.eup %1629 }
 0x3e6   : > { %v673_v51 = vmul.f32 0.5, %v1630_v50 }
 0x3e8   : > { %v674_v52 = vadd.f32 0.5, %v673_v51 }
 0x3ea   : > { %v679_v57 = vmul.f32 %v677_v56, %v674_v52 }
 0x456   : > { %v682_v53 = vpop.permute.xlu0 %681 }
 0x457   : > { %v684_v54 = vmul.f32 %v682_v53, %v674_v52 }
 0x459   : > { %686 = vrot.lane.b32.xlu1 %v684_v54, %s1784_s28 }
 0x4cb   : > { %v687_v58 = vpop.permute.xlu1 %686 }
 0x4cc   : > { %v689_v59 = vadd.f32 %v687_v58, %v679_v57  ;;  %v883_v58 = vstv %s882_s29 }
 0x4cd   : > { %vm2029_vm7 = vcmp.eq.s32.totalorder %v883_v58, 1 }
 0x4ce   : > { %1631 = vtanh.f32 %v689_v59  ;;  %v704_v24 = vsel %vm1977_vm5, %v689_v59, %v677_v56 }
 0x4cf   : > { %v769_v25 = vrot.slane %v704_v24, 6 }
 0x4d8   : > { %v1632_v60 = vpop.eup %1631 }
 0x4d9   : > { %692 = vrot.lane.b32.xlu0 %v1632_v60, %s1783_s18 }
 0x54b   : > { %v693_v62 = vpop.permute.xlu0 %692 }
 0x54c   : > { %v695_v0 = vmul.f32 %v693_v62, %v674_v52 }
 0x54e   : > { %v1983_v2 = vsel %vm1977_vm5, %v695_v0, %v701_v63 }
 0x54f   : > { %v711_v5 = vpack.c.bf16 %v1983_v2, %v1983_v2  ;;  %v793_v32 = vrot.slane %v1983_v2, 6 }
 0x551   : > { %v713_v7 = vrot.slane %v711_v5, 1 }
 0x553   : > { %714 = vrot.lane.b32.xlu1 %v713_v7, %s1784_s28 }
 0x5c5   : > { %v715_v8 = vpop.permute.xlu1 %714 }
 0x5c6   : > { %1529 = vmatmul.mubr.msk.bf16.vlgmr.msra.gmra.mrb[4].mxu1 %vm533_vm3, %v715_v8 }
 0x5c7   : > { %1541 = vmatpush3.bf16.msra.mxu1 %v1906_v4  ;;  %1544 = vmatprep.mubr.msk.bf16.mxu1 %vm1782_vm1, %v1781_v3 }
 0x5c8   : > { %1542 = vmatprep.subr.bf16.mxu1 %v1781_v3 }
 0x5cb   : > { %1543 = vmatpush3.bf16.msra.mxu1 %v1911_v6 }
 0x5cc   : > { %1556 = vmatprep.subr.bf16.mxu1 %v1781_v3 }
 0x699   : > { %v753_v9 = vpop.f32.mrb[4].mxu1 }
 0x69a   : > { %v760_v10 = vrot.slane %v753_v9, 4  ;;  %v1530_v11 = vpop.f32.mrb[5].mxu1 }
 0x69b   : > { %v756_v13 = vpop.f32.mrb[6].mxu1 }
 0x69c   : > { %v762_v15 = vadd.f32 %v760_v10, %v1937_v12  ;;  %v1531_v16 = vpop.f32.mrb[7].mxu1 }
 0x69e   : > { %1633 = vtanh.f32 %v762_v15  ;;  %v763_v18 = vmul.f32 0.5, %v762_v15 }
 0x6a0   : > { %1635 = vtanh.f32 %v763_v18 }
 0x6a8   : > { %v1634_v17 = vpop.eup %1633 }
 0x6a9   : > { %773 = vrot.lane.b32.xlu0 %v1634_v17, %s1783_s18 }
 0x6aa   : > { %v1636_v19 = vpop.eup %1635 }
 0x6ab   : > { %v765_v20 = vmul.f32 0.5, %v1636_v19 }
 0x6ad   : > { %v766_v21 = vadd.f32 0.5, %v765_v20 }
 0x6af   : > { %v771_v26 = vmul.f32 %v769_v25, %v766_v21 }
 0x71b   : > { %v774_v22 = vpop.permute.xlu0 %773 }
 0x71c   : > { %v776_v23 = vmul.f32 %v774_v22, %v766_v21 }
 0x71e   : > { %778 = vrot.lane.b32.xlu1 %v776_v23, %s1784_s28 }
 0x790   : > { %v779_v27 = vpop.permute.xlu1 %778 }
 0x791   : > { %v781_v28 = vadd.f32 %v779_v27, %v771_v26  ;;  %v972_v27 = vstv %s971_s30 }
 0x792   : > { %vm2054_vm8 = vcmp.eq.s32.totalorder %v972_v27, 1 }
 0x793   : > { %1637 = vtanh.f32 %v781_v28  ;;  %v796_v53 = vsel %vm2003_vm6, %v781_v28, %v769_v25 }
 0x794   : > { %v861_v54 = vrot.slane %v796_v53, 6  ;;  %v1062_v53 = vstv %s1061_s11 }
 0x795   : > { %vm2079_vm9 = vcmp.eq.s32.totalorder %v1062_v53, 1 }
 0x79d   : > { %v1638_v29 = vpop.eup %1637 }
 0x79e   : > { %784 = vrot.lane.b32.xlu0 %v1638_v29, %s1783_s18 }
 0x810   : > { %v785_v31 = vpop.permute.xlu0 %784 }
 0x811   : > { %v787_v33 = vmul.f32 %v785_v31, %v766_v21 }
 0x813   : > { %v2009_v35 = vsel %vm2003_vm6, %v787_v33, %v793_v32 }
 0x814   : > { %v803_v36 = vpack.c.bf16 %v2009_v35, %v2009_v35  ;;  %v885_v60 = vrot.slane %v2009_v35, 6 }
 0x816   : > { %v805_v37 = vrot.slane %v803_v36, 2 }
 0x818   : > { %806 = vrot.lane.b32.xlu1 %v805_v37, %s1784_s28 }
 0x88a   : > { %v807_v38 = vpop.permute.xlu1 %806 }
 0x88b   : > { %1537 = vmatmul.mubr.msk.bf16.vlgmr.msra.gmra.mrb[8].mxu0 %vm533_vm3, %v807_v38 }
 0x88c   : > { %1549 = vmatpush3.bf16.msra.mxu0 %v1906_v4  ;;  %1552 = vmatprep.mubr.msk.bf16.mxu0 %vm1782_vm1, %v1781_v3 }
 0x88d   : > { %1550 = vmatprep.subr.bf16.mxu0 %v1781_v3 }
 0x890   : > { %1551 = vmatpush3.bf16.msra.mxu0 %v1911_v6 }
 0x891   : > { %1564 = vmatprep.subr.bf16.mxu0 %v1781_v3 }
 0x95e   : > { %v845_v40 = vpop.f32.mrb[8].mxu0 }
 0x95f   : > { %v852_v41 = vrot.slane %v845_v40, 2  ;;  %v1538_v42 = vpop.f32.mrb[9].mxu0 }
 0x960   : > { %v848_v43 = vpop.f32.mrb[10].mxu0 }
 0x961   : > { %v854_v44 = vadd.f32 %v852_v41, %v1937_v12  ;;  %v1539_v45 = vpop.f32.mrb[11].mxu0 }
 0x963   : > { %1639 = vtanh.f32 %v854_v44  ;;  %v855_v47 = vmul.f32 0.5, %v854_v44 }
 0x965   : > { %1641 = vtanh.f32 %v855_v47 }
 0x96d   : > { %v1640_v46 = vpop.eup %1639 }
 0x96e   : > { %865 = vrot.lane.b32.xlu0 %v1640_v46, %s1783_s18 }
 0x96f   : > { %v1642_v48 = vpop.eup %1641 }
 0x970   : > { %v857_v49 = vmul.f32 0.5, %v1642_v48 }
 0x972   : > { %v858_v50 = vadd.f32 0.5, %v857_v49 }
 0x974   : > { %v863_v12 = vmul.f32 %v861_v54, %v858_v50 }
 0x9e0   : > { %v866_v51 = vpop.permute.xlu0 %865 }
 0x9e1   : > { %v868_v52 = vmul.f32 %v866_v51, %v858_v50 }
 0x9e3   : > { %870 = vrot.lane.b32.xlu1 %v868_v52, %s1784_s28 }
 0xa55   : > { %v871_v55 = vpop.permute.xlu1 %870 }
 0xa56   : > { %v873_v56 = vadd.f32 %v871_v55, %v863_v12 }
 0xa58   : > { %1643 = vtanh.f32 %v873_v56  ;;  %v888_v21 = vsel %vm2029_vm7, %v873_v56, %v861_v54 }
 0xa59   : > { %v950_v22 = vrot.slane %v888_v21, 6 }
 0xa62   : > { %v1644_v57 = vpop.eup %1643 }
 0xa63   : > { %876 = vrot.lane.b32.xlu0 %v1644_v57, %s1783_s18 }
 0xad5   : > { %v877_v59 = vpop.permute.xlu0 %876 }
 0xad6   : > { %v879_v61 = vmul.f32 %v877_v59, %v858_v50 }
 0xad8   : > { %v2035_v63 = vsel %vm2029_vm7, %v879_v61, %v885_v60 }
 0xad9   : > { %v895_v0 = vpack.c.bf16 %v2035_v63, %v2035_v63  ;;  %v974_v29 = vrot.slane %v2035_v63, 6 }
 0xadb   : > { %v897_v1 = vrot.slane %v895_v0, 3 }
 0xadd   : > { %898 = vrot.lane.b32.xlu1 %v897_v1, %s1784_s28 }
 0xb4f   : > { %v899_v5 = vpop.permute.xlu1 %898 }
 0xb50   : > { %1545 = vmatmul.mubr.msk.bf16.vlgmr.msra.gmra.mrb[8].mxu1 %vm533_vm3, %v899_v5 }
 0xb51   : > { %1557 = vmatpush3.bf16.msra.mxu1 %v1906_v4  ;;  %1560 = vmatprep.mubr.msk.bf16.mxu1 %vm1782_vm1, %v1781_v3 }
 0xb52   : > { %1558 = vmatprep.subr.bf16.mxu1 %v1781_v3 }
 0xb55   : > { %1559 = vmatpush3.bf16.msra.mxu1 %v1911_v6 }
 0xc23   : > { %v937_v7 = vpop.f32.mrb[8].mxu1 }
 0xc24   : > { %v943_v8 = vadd.f32 %v937_v7, %v1939_v14  ;;  %v1546_v9 = vpop.f32.mrb[9].mxu1 }
 0xc25   : > { %v940_v10 = vpop.f32.mrb[10].mxu1 }
 0xc26   : > { %1645 = vtanh.f32 %v943_v8  ;;  %v1547_v11 = vpop.f32.mrb[11].mxu1  ;;  %v944_v15 = vmul.f32 0.5, %v943_v8 }
 0xc28   : > { %1647 = vtanh.f32 %v944_v15 }
 0xc30   : > { %v1646_v13 = vpop.eup %1645 }
 0xc31   : > { %954 = vrot.lane.b32.xlu0 %v1646_v13, %s1783_s18 }
 0xc32   : > { %v1648_v16 = vpop.eup %1647 }
 0xc33   : > { %v946_v17 = vmul.f32 0.5, %v1648_v16 }
 0xc35   : > { %v947_v18 = vadd.f32 0.5, %v946_v17 }
 0xc37   : > { %v952_v23 = vmul.f32 %v950_v22, %v947_v18 }
 0xca3   : > { %v955_v19 = vpop.permute.xlu0 %954 }
 0xca4   : > { %v957_v20 = vmul.f32 %v955_v19, %v947_v18 }
 0xca6   : > { %959 = vrot.lane.b32.xlu1 %v957_v20, %s1784_s28 }
 0xd18   : > { %v960_v24 = vpop.permute.xlu1 %959 }
 0xd19   : > { %v962_v25 = vadd.f32 %v960_v24, %v952_v23  ;;  %v1153_v23 = vstv %s1152_s12 }
 0xd1a   : > { %vm2099_vm10 = vcmp.eq.s32.totalorder %v1153_v23, 1 }
 0xd1b   : > { %1649 = vtanh.f32 %v962_v25 }
 0xd25   : > { %v1650_v26 = vpop.eup %1649 }
 0xd26   : > { %965 = vrot.lane.b32.xlu0 %v1650_v26, %s1783_s18 }
 0xd98   : > { %v966_v28 = vpop.permute.xlu0 %965 }
 0xd99   : > { %v968_v30 = vmul.f32 %v966_v28, %v947_v18 }
 0xd9b   : > { %v2060_v32 = vsel %vm2054_vm8, %v968_v30, %v974_v29 }
 0xd9c   : > { %v983_v33 = vpack.c.bf16 %v2060_v32, %v2060_v32  ;;  %v1064_v12 = vrot.slane %v2060_v32, 6 }
 0xd9e   : > { %985 = vrot.lane.b32.xlu1 %v983_v33, %s1784_s28 }
 0xe10   : > { %v986_v34 = vpop.permute.xlu1 %985 }
 0xe11   : > { %1553 = vmatmul.mubr.msk.bf16.vlgmr.msra.gmra.mrb[12].mxu0 %vm533_vm3, %v986_v34 }
 0xe12   : > { %1565 = vmatpush3.bf16.msra.mxu0 %v1906_v4  ;;  %1568 = vmatprep.mubr.msk.bf16.mxu0 %vm1782_vm1, %v1781_v3 }
 0xe13   : > { %1566 = vmatprep.subr.bf16.mxu0 %v1781_v3 }
 0xe16   : > { %1567 = vmatpush3.bf16.msra.mxu0 %v1911_v6  ;;  %v977_v6 = vsel %vm2054_vm8, %v962_v25, %v950_v22 }
 0xe17   : > { %v1040_v48 = vrot.slane %v977_v6, 6 }
 0xee4   : > { %v1024_v36 = vpop.f32.mrb[12].mxu0 }
 0xee5   : > { %v1031_v37 = vrot.slane %v1024_v36, 6  ;;  %v1554_v38 = vpop.f32.mrb[13].mxu0 }
 0xee6   : > { %v1027_v40 = vpop.f32.mrb[14].mxu0 }
 0xee7   : > { %v1033_v41 = vadd.f32 %v1031_v37, %v1939_v14  ;;  %v1555_v42 = vpop.f32.mrb[15].mxu0 }
 0xee9   : > { %1651 = vtanh.f32 %v1033_v41  ;;  %v1034_v44 = vmul.f32 0.5, %v1033_v41 }
 0xeeb   : > { %1653 = vtanh.f32 %v1034_v44 }
 0xef3   : > { %v1652_v43 = vpop.eup %1651 }
 0xef4   : > { %1044 = vrot.lane.b32.xlu0 %v1652_v43, %s1783_s18 }
 0xef5   : > { %v1654_v4 = vpop.eup %1653 }
 0xef6   : > { %v1036_v45 = vmul.f32 0.5, %v1654_v4 }
 0xef8   : > { %v1037_v46 = vadd.f32 0.5, %v1036_v45 }
 0xefa   : > { %v1042_v49 = vmul.f32 %v1040_v48, %v1037_v46 }
 0xf66   : > { %v1045_v3 = vpop.permute.xlu0 %1044 }
 0xf67   : > { %v1047_v47 = vmul.f32 %v1045_v3, %v1037_v46 }
 0xf69   : > { %1049 = vrot.lane.b32.xlu1 %v1047_v47, %s1784_s28 }
 0xfdb   : > { %v1050_v50 = vpop.permute.xlu1 %1049 }
 0xfdc   : > { %v1052_v51 = vadd.f32 %v1050_v50, %v1042_v49 }
 0xfde   : > { %1655 = vtanh.f32 %v1052_v51  ;;  %v1067_v17 = vsel %vm2079_vm9, %v1052_v51, %v1040_v48 }
 0xfdf   : > { %v1131_v18 = vrot.slane %v1067_v17, 6 }
 0xfe8   : > { %v1656_v52 = vpop.eup %1655 }
 0xfe9   : > { %1055 = vrot.lane.b32.xlu0 %v1656_v52, %s1783_s18 }
0x105b   : > { %v1056_v54 = vpop.permute.xlu0 %1055 }
0x105c   : > { %v1058_v55 = vmul.f32 %v1056_v54, %v1037_v46 }
0x105e   : > { %v2085_v57 = vsel %vm2079_vm9, %v1058_v55, %v1064_v12 }
0x105f   : > { %v1073_v58 = vpack.c.bf16 %v2085_v57, %v2085_v57  ;;  %v1155_v25 = vrot.slane %v2085_v57, 6 }
0x1061   : > { %v1075_v59 = vrot.slane %v1073_v58, 1 }
0x1063   : > { %1076 = vrot.lane.b32.xlu1 %v1075_v59, %s1784_s28 }
0x10d5   : > { %v1077_v60 = vpop.permute.xlu1 %1076 }
0x10d6   : > { %1561 = vmatmul.mubr.msk.bf16.vlgmr.msra.gmra.mrb[12].mxu1 %vm533_vm3, %v1077_v60 }
0x11a9   : > { %v1115_v61 = vpop.f32.mrb[12].mxu1 }
0x11aa   : > { %v1122_v62 = vrot.slane %v1115_v61, 4  ;;  %v1562_v0 = vpop.f32.mrb[13].mxu1 }
0x11ab   : > { %v1118_v1 = vpop.f32.mrb[14].mxu1 }
0x11ac   : > { %v1124_v5 = vadd.f32 %v1122_v62, %v1939_v14  ;;  %v1563_v7 = vpop.f32.mrb[15].mxu1 }
0x11ae   : > { %1657 = vtanh.f32 %v1124_v5  ;;  %v1125_v9 = vmul.f32 0.5, %v1124_v5 }
0x11b0   : > { %1659 = vtanh.f32 %v1125_v9 }
0x11b8   : > { %v1658_v8 = vpop.eup %1657 }
0x11b9   : > { %1135 = vrot.lane.b32.xlu0 %v1658_v8, %s1783_s18 }
0x11ba   : > { %v1660_v10 = vpop.eup %1659 }
0x11bb   : > { %v1127_v11 = vmul.f32 0.5, %v1660_v10 }
0x11bd   : > { %v1128_v13 = vadd.f32 0.5, %v1127_v11 }
0x11bf   : > { %v1133_v19 = vmul.f32 %v1131_v18, %v1128_v13 }
0x122b   : > { %v1136_v15 = vpop.permute.xlu0 %1135 }
0x122c   : > { %v1138_v16 = vmul.f32 %v1136_v15, %v1128_v13 }
0x122e   : > { %1140 = vrot.lane.b32.xlu1 %v1138_v16, %s1784_s28 }
0x12a0   : > { %v1141_v20 = vpop.permute.xlu1 %1140 }
0x12a1   : > { %v1143_v21 = vadd.f32 %v1141_v20, %v1133_v19 }
0x12a3   : > { %1661 = vtanh.f32 %v1143_v21 }
0x12ad   : > { %v1662_v22 = vpop.eup %1661 }
0x12ae   : > { %1146 = vrot.lane.b32.xlu0 %v1662_v22, %s1783_s18 }
0x1320   : > { %v1147_v24 = vpop.permute.xlu0 %1146 }
0x1321   : > { %v1149_v26 = vmul.f32 %v1147_v24, %v1128_v13 }
0x1323   : > { %v2105_v28 = vsel %vm2099_vm10, %v1149_v26, %v1155_v25 }
0x1324   : > { %v1164_v29 = vpack.c.bf16 %v2105_v28, %v2105_v28  ;;  %v1246_v54 = vrot.slane %v2105_v28, 6 }
0x1326   : > { %v1166_v30 = vrot.slane %v1164_v29, 2 }
0x1328   : > { %1167 = vrot.lane.b32.xlu1 %v1166_v30, %s1784_s28 }
0x139a   : > { %v1168_v31 = vpop.permute.xlu1 %1167 }
0x139b   : > { %1569 = vmatmul.mubr.msk.bf16.vlgmr.msra.gmra.mrb[16].mxu0 %vm533_vm3, %v1168_v31 }
0x146e   : > { %v1206_v33 = vpop.f32.mrb[16].mxu0 }
0x146f   : > { %v1213_v34 = vrot.slane %v1206_v33, 2  ;;  %v1570_v36 = vpop.f32.mrb[17].mxu0 }
0x1470   : > { %v1209_v37 = vpop.f32.mrb[18].mxu0 }
0x1471   : > { %v1215_v38 = vadd.f32 %v1213_v34, %v1939_v14  ;;  %v1571_v40 = vpop.f32.mrb[19].mxu0  ;;  %v1158_v14 = vsel %vm2099_vm10, %v1143_v21, %v1131_v18 }
0x1472   : > { %v1222_v3 = vrot.slane %v1158_v14, 6 }
0x1473   : > { %1663 = vtanh.f32 %v1215_v38  ;;  %v1216_v42 = vmul.f32 0.5, %v1215_v38 }
0x1475   : > { %1665 = vtanh.f32 %v1216_v42 }
0x147d   : > { %v1664_v41 = vpop.eup %1663 }
0x147e   : > { %1226 = vrot.lane.b32.xlu0 %v1664_v41, %s1783_s18 }
0x147f   : > { %v1666_v43 = vpop.eup %1665 }
0x1480   : > { %v1218_v44 = vmul.f32 0.5, %v1666_v43 }
0x1482   : > { %v1219_v4 = vadd.f32 0.5, %v1218_v44 }
0x1484   : > { %v1224_v47 = vmul.f32 %v1222_v3, %v1219_v4 }
0x14f0   : > { %v1227_v45 = vpop.permute.xlu0 %1226 }
0x14f1   : > { %v1229_v46 = vmul.f32 %v1227_v45, %v1219_v4 }
0x14f3   : > { %1231 = vrot.lane.b32.xlu1 %v1229_v46, %s1784_s28 }
0x14f7   : > { %615 = vrot.lane.b32.xlu1 %v1957_v39, %s1784_s28 }
0x14fb   : > { %798 = vrot.lane.b32.xlu1 %v2009_v35, %s1784_s28  ;;  %v1244_v35 = vstv %s1243_s13 }
0x14fc   : > { %vm1245_vm13 = vcmp.eq.s32.totalorder %v1244_v35, 1 }
0x14ff   : > { %979 = vrot.lane.b32.xlu1 %v2060_v32, %s1784_s28 }
0x1565   : > { %v1232_v6 = vpop.permute.xlu1 %1231 }
0x1566   : > { %v1234_v48 = vadd.f32 %v1232_v6, %v1224_v47 }
0x1568   : > { %1667 = vtanh.f32 %v1234_v48  ;;  %v1249_v51 = vsel %vm1245_vm13, %v1234_v48, %v1222_v3 }
0x1569   : > { %v616_v49 = vpop.permute.xlu1 %615 }
0x156a   : > { %619 = vst.msk [vmem:[%s1882_s17] sm:$0x3] %vm618_vm11, %v616_v49 }
0x156d   : > { %v799_v39 = vpop.permute.xlu1 %798 }
0x156e   : > { %802 = vst.msk [vmem:[%s1882_s17] sm:$0x30] %vm801_vm12, %v799_v39 }
0x1571   : > { %v980_v32 = vpop.permute.xlu1 %979 }
0x1572   : > { %v1668_v50 = vpop.eup %1667  ;;  %982 = vst.msk [vmem:[%s1882_s17 + $0x8] sm:$0x3] %vm618_vm11, %v980_v32 }
0x1573   : > { %1237 = vrot.lane.b32.xlu0 %v1668_v50, %s1783_s18 }
0x1577   : > { %1257 = vrot.lane.b32.xlu0 %v1249_v51, %s1785_s19 }
0x157b   : > { %706 = vrot.lane.b32.xlu0 %v1983_v2, %s1784_s28 }
0x157f   : > { %890 = vrot.lane.b32.xlu0 %v2035_v63, %s1784_s28 }
0x1583   : > { %1069 = vrot.lane.b32.xlu0 %v2085_v57, %s1784_s28 }
0x15e5   : > { %v1238_v52 = vpop.permute.xlu0 %1237 }
0x15e6   : > { %v1240_v53 = vmul.f32 %v1238_v52, %v1219_v4 }
0x15e8   : > { %v1248_v2 = vsel %vm1245_vm13, %v1240_v53, %v1246_v54 }
0x15e9   : > { %1251 = vrot.lane.b32.xlu1 %v1248_v2, %s1784_s28  ;;  %v1258_v63 = vpop.permute.xlu0 %1257 }
0x15ea   : > { %1260 = vst.msk [vmem:[#allocation4 - $0x6] sm:$0xc0] %vm893_vm14, %v1258_v63  ;;  %1262 = vst.msk [vmem:[#allocation10 - $0x6] sm:$0xc0] %vm893_vm14, %v1258_v63 }
0x15eb   : > { %1706 = shalt.err (!%p1703_p6)
}
0x15ec   : > { %s1707_s19 = scalar_lea.hbm %s2221_s10, 32 }
0x15ed   : > { %p1708_p7 = scmp.ne.s32.totalorder %s2221_s10, %s1707_s19  ;;  %p1713_p10 = scmp.lt.u32.totalorder %s1707_s19, %s2221_s10 }
0x15ef   : > { %p1709_p8 = pnand %p1708_p7, %p2138_p13 }
0x15f1   : > { %p1710_p9 = pneg %p1709_p8 }
0x15f3   : > { %p1715_p11 = pnand %p1713_p10, %p1710_p9 }
0x15f5   : > { %1718 = shalt.err (!%p1715_p11)
}
0x15f6   : > { %1575 = dma.vmem_to_hbm [thread:$0]  (%p2138_p13), %s1295_s15, 32, %s2221_s10, [#allocation11]   ;;  %1160 = vrot.lane.b32.xlu1 %v2105_v28, %s1784_s28  ;;  %v707_v12 = vpop.permute.xlu0 %706 }
0x15f7   : > { %710 = vst.msk [vmem:[%s1882_s17] sm:$0xc] %vm709_vm15, %v707_v12  ;;  %s1787_s11 = smov [#allocation8]  }
0x15f8   : > { %s1283_s12 = sshll.u32 %s1787_s11, 4  ;;  %s1284_s12 = int_to_ptr.vmem [resolvable:$true] %s1283_s12 }
0x15f9   : > { %s1719_s28 = scalar_lea.vmem %s1284_s12, 32  ;;  %p1726_p2 = scmp.lt.s32.totalorder %s1284_s12, %s1284_s12 }
0x15fa   : > { %v891_v55 = vpop.permute.xlu0 %890  ;;  %p1720_p12 = scmp.ne.s32.totalorder %s1284_s12, %s1719_s28  ;;  %p1727_p3 = scmp.lt.s32.totalorder %s1719_s28, %s1719_s28 }
0x15fb   : > { %894 = vst.msk [vmem:[%s1882_s17] sm:$0xc0] %vm893_vm14, %v891_v55 }
0x15fc   : > { %p1721_p0 = pnand %p1720_p12, %p2138_p13  ;;  %p1728_p4 = por %p1727_p3, %p1726_p2 }
0x15fe   : > { %v1070_v56 = vpop.permute.xlu0 %1069  ;;  %p1722_p1 = pneg %p1721_p0 }
0x15ff   : > { %1072 = vst.msk [vmem:[%s1882_s17 + $0x8] sm:$0xc] %vm709_vm15, %v1070_v56 }
0x1600   : > { %p1729_p5 = pnand %p1728_p4, %p1722_p1 }
0x165b   : > { %v1252_v57 = vpop.permute.xlu1 %1251 }
0x165c   : > { %1254 = vst.msk [vmem:[%s1882_s17 + $0x8] sm:$0xc0] %vm893_vm14, %v1252_v57  ;;  %1255 = vst.msk [vmem:[#allocation3 - $0x6] sm:$0xc0] %vm893_vm14, %v1252_v57 }
0x165d   : > { %1261 = vst.msk [vmem:[#allocation8 - $0x6] sm:$0xc0] %vm893_vm14, %v1252_v57 }
0x165e   : > { %1732 = shalt.err (!%p1729_p5)
}
0x165f   : > { %s1733_s15 = scalar_lea.hbm %s2220_s9, 32 }
0x1660   : > { %p1734_p6 = scmp.ne.s32.totalorder %s2220_s9, %s1733_s15  ;;  %p1739_p9 = scmp.lt.u32.totalorder %s1733_s15, %s2220_s9 }
0x1662   : > { %p1735_p7 = pnand %p1734_p6, %p2138_p13 }
0x1664   : > { %p1736_p8 = pneg %p1735_p7 }
0x1666   : > { %p1741_p10 = pnand %p1739_p9, %p1736_p8 }
0x1668   : > { %1744 = shalt.err (!%p1741_p10)
}
0x1669   : > { %1573 = dma.vmem_to_hbm [thread:$0]  (%p2138_p13), %s1284_s12, 32, %s2220_s9, [#allocation9]   ;;  %v1161_v58 = vpop.permute.xlu1 %1160 }
0x166a   : > { %1163 = vst.msk [vmem:[%s1882_s17 + $0x8] sm:$0x30] %vm801_vm12, %v1161_v58 }
0x166b   : > { %1760 = dma.done.wait (%p2138_p13), [#allocation9], 32  }
0x166c   : > { %1762 = vsyncadd (%p2138_p13), [#allocation9], 4294967264 }
0x166d   : > { %1764 = dma.done.wait (%p2138_p13), [#allocation11], 32  }
0x166e   : > { %1766 = vsyncadd (%p2138_p13), [#allocation11], 4294967264 }
0x166f PF: > { %s33_s23 = sadd.s32 1, %s1777_s23   ;;  %s2239_s1 = smov %s1773_s22 }
0x1670   : > { %p30_p11 = scmp.ge.s32.totalorder %s33_s23, 4   ;;  %s2240_s22 = smov %s2242_s25 }
0x1672   :  { %32 = sbr.rel (!%p30_p11) target bundleno = 28 (0x1c), region = 104 }
0x1679   :  { %1323 = vsyncpa [#allocation9], 1 }
0x167a   :  { %1325 = vsyncpa [#allocation9 + $0x1], 1 }
0x167b   :  { %1326 = vsyncpa [#allocation11], 1 }

</bundles_post_ra>
